<compile_context>
chip_gen: v5e
topology: v5e:2x2
jax: 0.10.0
libtpu: 0.0.40
codegen_flags: <defaults>
</compile_context>

<pallas_src>
import functools

import jax
import jax.numpy as jnp
from jax.experimental import pallas as pl
from jax.experimental.pallas import tpu as pltpu


def _mlp_kernel(x_ref, wg_ref, wu_ref, wd_ref, o_ref, acc_ref):
    """One (token-tile, intermediate-tile) step of the fused DeepSeek MLP."""
    it = pl.program_id(1)

    @pl.when(it == 0)
    def _():
        acc_ref[...] = jnp.zeros_like(acc_ref)

    x = x_ref[...]                                              # [tm, H]
    # gate / up projections for this intermediate tile (MXU, f32 accumulation)
    gate = jnp.dot(x, wg_ref[...], preferred_element_type=jnp.float32)  # [tm, ti]
    up = jnp.dot(x, wu_ref[...], preferred_element_type=jnp.float32)    # [tm, ti]
    # SiluAndMul in f32 on the slab (VPU + EUP)
    act = (gate * jax.nn.sigmoid(gate)) * up                    # f32 [tm, ti]
    # down projection: accumulate the partial contribution of this I-tile
    acc_ref[...] += jnp.dot(act.astype(wd_ref.dtype), wd_ref[...],
                            preferred_element_type=jnp.float32)          # [tm, H]

    @pl.when(it == pl.num_programs(1) - 1)
    def _():
        o_ref[...] = acc_ref[...].astype(o_ref.dtype)


def parallel_deepseek_mlp(x, w_gate_up, w_down, residual, *,
                          block_tokens=None, block_intermediate=None):
    """x: [T, H]; w_gate_up: [H, 2*I]; w_down: [I, H]; residual passed through.

    Weights are pre-transposed to [in, out] so the kernel does plain
    (tokens x K) @ (K x N) MXU matmuls.
    """
    T, H = x.shape
    two_I = w_gate_up.shape[1]
    I = two_I // 2
    assert w_gate_up.shape == (H, two_I)
    assert w_down.shape == (I, H)

    # Token tile: keep the grid populated so the DMA pipeline has work and
    # the token axis can be megacore-sharded.  Never default to T as a whole
    # unless T is small.
    tm = block_tokens if block_tokens is not None else min(256, T)
    assert T % tm == 0, f"T={T} must be divisible by token tile {tm}"

    # Intermediate (reduction) tile: lane-aligned slab of the gate/up width.
    ti = block_intermediate if block_intermediate is not None else min(512, I)
    assert I % ti == 0, f"I={I} must be divisible by intermediate tile {ti}"
    assert ti == I or ti % 128 == 0, "intermediate tile must be 128-aligned"

    # Split the merged gate_up weight once in the wrapper (one-time XLA slice)
    # so the kernel never lane-slices a [tm, 2I] intermediate.
    w_gate = w_gate_up[:, :I]
    w_up = w_gate_up[:, I:]

    x_itemsize = jnp.dtype(x.dtype).itemsize
    w_itemsize = jnp.dtype(w_gate_up.dtype).itemsize

    # Explicit VMEM budget: double-buffered x / weight / out tiles + f32 acc,
    # with headroom; capped at 48 MiB so it fits v7x's 64 MiB physical VMEM.
    vmem_bytes = (2 * tm * H * x_itemsize                 # x tile (2 bufs)
                  + 2 * (2 * H * ti + ti * H) * w_itemsize  # wg/wu/wd tiles (2 bufs)
                  + 2 * tm * H * x_itemsize               # out tile (2 bufs)
                  + tm * H * 4)                            # f32 accumulator
    vmem_limit = min(max(int(vmem_bytes * 1.5) + (4 << 20), 32 << 20), 48 << 20)

    cost = pl.CostEstimate(
        flops=6 * T * H * I,                 # gate + up + down matmuls
        transcendentals=T * I,               # sigmoid
        bytes_accessed=(T * H * x_itemsize                       # x
                        + (w_gate_up.size + w_down.size) * w_itemsize
                        + T * H * x_itemsize))                   # out

    out = pl.pallas_call(
        _mlp_kernel,
        out_shape=jax.ShapeDtypeStruct((T, H), x.dtype),
        grid_spec=pltpu.PrefetchScalarGridSpec(
            num_scalar_prefetch=0,
            grid=(T // tm, I // ti),
            in_specs=[
                # x tile: constant along the reduction axis (fetched once per i)
                pl.BlockSpec((tm, H), lambda i, j: (i, 0)),
                # gate / up weight slabs: streamed along the reduction axis
                pl.BlockSpec((H, ti), lambda i, j: (0, j)),
                pl.BlockSpec((H, ti), lambda i, j: (0, j)),
                # down weight slab: streamed along the reduction axis
                pl.BlockSpec((ti, H), lambda i, j: (j, 0)),
            ],
            # Output resident across the reduction axis (written on last j).
            out_specs=pl.BlockSpec((tm, H), lambda i, j: (i, 0)),
            scratch_shapes=[pltpu.VMEM((tm, H), jnp.float32)],
        ),
        compiler_params=pltpu.CompilerParams(
            dimension_semantics=("parallel", "arbitrary"),
            vmem_limit_bytes=vmem_limit),
        cost_estimate=cost,
    )(x, w_gate, w_up, w_down)

    # TODO(synk): multi-device TP all_gather / reduce_scatter collectives are
    # identity here (world_size == 1); not implemented as remote DMA.
    return out, residual


def _reference(x, w_gate_up, w_down):
    hp = jax.lax.Precision.HIGHEST
    gu = jnp.dot(x, w_gate_up, precision=hp)
    I = w_down.shape[0]
    gate, up = gu[:, :I], gu[:, I:]
    act = (gate * jax.nn.sigmoid(gate)) * up
    return jnp.dot(act, w_down, precision=hp)


if __name__ == "__main__":
    # Small-but-tileable shapes consistent with the module's forward:
    # tokens=256, hidden_size=256, intermediate_size=512.
    T, H, I = 256, 256, 512

    key = jax.random.PRNGKey(0)
    kx, kr, kg, kd = jax.random.split(key, 4)

    dtype = jnp.bfloat16
    x = jax.random.normal(kx, (T, H), dtype=jnp.float32).astype(dtype)
    residual = jax.random.normal(kr, (T, H), dtype=jnp.float32).astype(dtype)
    # PyTorch Linear stores [out, in]; we keep weights pre-transposed to
    # [in, out] for the kernel layout.
    w_gate_up = (jax.random.normal(kg, (H, 2 * I), dtype=jnp.float32)
                 * 0.05).astype(dtype)
    w_down = (jax.random.normal(kd, (I, H), dtype=jnp.float32)
              * 0.05).astype(dtype)

    out, res = parallel_deepseek_mlp(x, w_gate_up, w_down, residual,
                                     block_tokens=128, block_intermediate=256)
    out = jax.block_until_ready(out)
    res = jax.block_until_ready(res)

    # f32 reference computed from the same (bf16-valued) inputs.
    ref = _reference(x.astype(jnp.float32), w_gate_up.astype(jnp.float32),
                     w_down.astype(jnp.float32))
    assert out.shape == (T, H)
    assert jnp.allclose(out.astype(jnp.float32), ref, atol=5e-2, rtol=5e-2), \
        "mismatch vs reference"
    assert jnp.array_equal(res, residual)

    print("KERNEL_OK")
</pallas_src>

<mosaic_0001>
module attributes {stable_mosaic.version = 11 : i64} {
  func.func @_mlp_kernel(%arg0: i32, %arg1: i32, %arg2: memref<128x256xbf16, #tpu.memory_space<vmem>>, %arg3: memref<256x256xbf16, #tpu.memory_space<vmem>>, %arg4: memref<256x256xbf16, #tpu.memory_space<vmem>>, %arg5: memref<256x256xbf16, #tpu.memory_space<vmem>>, %arg6: memref<128x256xbf16, #tpu.memory_space<vmem>>, %arg7: memref<128x256xf32, #tpu.memory_space<vmem>>) attributes {dimension_semantics = [#tpu.dimension_semantics<parallel>, #tpu.dimension_semantics<arbitrary>], iteration_bounds = array<i64: 2, 2>, scalar_prefetch = 0 : i64, scratch_operands = 1 : i64, tpu.core_type = #tpu.core_type<tc>, window_params = [{transform_indices = @transform_0, window_bounds = array<i64: 128, 256>}, {transform_indices = @transform_1, window_bounds = array<i64: 256, 256>}, {transform_indices = @transform_2, window_bounds = array<i64: 256, 256>}, {transform_indices = @transform_3, window_bounds = array<i64: 256, 256>}, {transform_indices = @transform_4, window_bounds = array<i64: 128, 256>}]} {
    %c0_i32 = arith.constant 0 : i32
    %0 = arith.cmpi eq, %arg1, %c0_i32 : i32
    %1 = arith.extui %0 : i1 to i32
    %c0_i32_0 = arith.constant 0 : i32
    %2 = arith.cmpi ne, %1, %c0_i32_0 : i32
    scf.if %2 {
      %cst_16 = arith.constant 0.000000e+00 : f32
      %24 = vector.broadcast %cst_16 : f32 to vector<128x256xf32>
      %c0_17 = arith.constant 0 : index
      %c0_18 = arith.constant 0 : index
      %25 = vector.load %arg7[%c0_17, %c0_18] : memref<128x256xf32, #tpu.memory_space<vmem>>, vector<128x256xf32>
      tpu.vector_store %arg7[%c0_17, %c0_18], %24 {strides = array<i32>} : memref<128x256xf32, #tpu.memory_space<vmem>>, vector<128x256xf32>,
    } else {
    }
    %c0 = arith.constant 0 : index
    %c0_1 = arith.constant 0 : index
    %3 = vector.load %arg2[%c0, %c0_1] : memref<128x256xbf16, #tpu.memory_space<vmem>>, vector<128x256xbf16>
    %c0_2 = arith.constant 0 : index
    %c0_3 = arith.constant 0 : index
    %4 = vector.load %arg3[%c0_2, %c0_3] : memref<256x256xbf16, #tpu.memory_space<vmem>>, vector<256x256xbf16>
    %cst = arith.constant dense<0.000000e+00> : vector<128x256xf32>
    %5 = tpu.matmul %3, %4, %cst {dimension_numbers = #tpu.dot_dimension_numbers<[1], [0], [0], [1], [0, 0, 1, 1], [], []>} : vector<128x256xbf16>, vector<256x256xbf16>, vector<128x256xf32> -> vector<128x256xf32>
    %c0_4 = arith.constant 0 : index
    %c0_5 = arith.constant 0 : index
    %6 = vector.load %arg4[%c0_4, %c0_5] : memref<256x256xbf16, #tpu.memory_space<vmem>>, vector<256x256xbf16>
    %cst_6 = arith.constant dense<0.000000e+00> : vector<128x256xf32>
    %7 = tpu.matmul %3, %6, %cst_6 {dimension_numbers = #tpu.dot_dimension_numbers<[1], [0], [0], [1], [0, 0, 1, 1], [], []>} : vector<128x256xbf16>, vector<256x256xbf16>, vector<128x256xf32> -> vector<128x256xf32>
    %8 = arith.negf %5 : vector<128x256xf32>
    %9 = math.exp %8 : vector<128x256xf32>
    %cst_7 = arith.constant 1.000000e+00 : f32
    %10 = vector.broadcast %cst_7 : f32 to vector<128x256xf32>
    %11 = arith.addf %10, %9 : vector<128x256xf32>
    %12 = arith.divf %10, %11 : vector<128x256xf32>
    %13 = arith.mulf %5, %12 : vector<128x256xf32>
    %14 = arith.mulf %13, %7 : vector<128x256xf32>
    %c0_8 = arith.constant 0 : index
    %c0_9 = arith.constant 0 : index
    %15 = vector.load %arg7[%c0_8, %c0_9] : memref<128x256xf32, #tpu.memory_space<vmem>>, vector<128x256xf32>
    %16 = arith.truncf %14 : vector<128x256xf32> to vector<128x256xbf16>
    %c0_10 = arith.constant 0 : index
    %c0_11 = arith.constant 0 : index
    %17 = vector.load %arg5[%c0_10, %c0_11] : memref<256x256xbf16, #tpu.memory_space<vmem>>, vector<256x256xbf16>
    %cst_12 = arith.constant dense<0.000000e+00> : vector<128x256xf32>
    %18 = tpu.matmul %16, %17, %cst_12 {dimension_numbers = #tpu.dot_dimension_numbers<[1], [0], [0], [1], [0, 0, 1, 1], [], []>} : vector<128x256xbf16>, vector<256x256xbf16>, vector<128x256xf32> -> vector<128x256xf32>
    %19 = arith.addf %15, %18 : vector<128x256xf32>
    %c0_13 = arith.constant 0 : index
    %c0_14 = arith.constant 0 : index
    %20 = vector.load %arg7[%c0_13, %c0_14] : memref<128x256xf32, #tpu.memory_space<vmem>>, vector<128x256xf32>
    tpu.vector_store %arg7[%c0_13, %c0_14], %19 {strides = array<i32>} : memref<128x256xf32, #tpu.memory_space<vmem>>, vector<128x256xf32>,
    %c1_i32 = arith.constant 1 : i32
    %21 = arith.cmpi eq, %arg1, %c1_i32 : i32
    %22 = arith.extui %21 : i1 to i32
    %c0_i32_15 = arith.constant 0 : i32
    %23 = arith.cmpi ne, %22, %c0_i32_15 : i32
    scf.if %23 {
      %c0_16 = arith.constant 0 : index
      %c0_17 = arith.constant 0 : index
      %24 = vector.load %arg7[%c0_16, %c0_17] : memref<128x256xf32, #tpu.memory_space<vmem>>, vector<128x256xf32>
      %25 = arith.truncf %24 : vector<128x256xf32> to vector<128x256xbf16>
      %c0_18 = arith.constant 0 : index
      %c0_19 = arith.constant 0 : index
      %26 = vector.load %arg6[%c0_18, %c0_19] : memref<128x256xbf16, #tpu.memory_space<vmem>>, vector<128x256xbf16>
      tpu.vector_store %arg6[%c0_18, %c0_19], %25 {strides = array<i32>} : memref<128x256xbf16, #tpu.memory_space<vmem>>, vector<128x256xbf16>,
    } else {
    }
    return
  }
  func.func @transform_0(%arg0: i32, %arg1: i32) -> (i32, i32) {
    %c0_i32 = arith.constant 0 : i32
    %c0_i32_0 = arith.constant 0 : i32
    return %arg0, %c0_i32 : i32, i32
  }
  func.func @transform_1(%arg0: i32, %arg1: i32) -> (i32, i32) {
    %c0_i32 = arith.constant 0 : i32
    %c0_i32_0 = arith.constant 0 : i32
    return %c0_i32, %arg1 : i32, i32
  }
  func.func @transform_2(%arg0: i32, %arg1: i32) -> (i32, i32) {
    %c0_i32 = arith.constant 0 : i32
    %c0_i32_0 = arith.constant 0 : i32
    return %c0_i32, %arg1 : i32, i32
  }
  func.func @transform_3(%arg0: i32, %arg1: i32) -> (i32, i32) {
    %c0_i32 = arith.constant 0 : i32
    %c0_i32_0 = arith.constant 0 : i32
    return %arg1, %c0_i32 : i32, i32
  }
  func.func @transform_4(%arg0: i32, %arg1: i32) -> (i32, i32) {
    %c0_i32 = arith.constant 0 : i32
    %c0_i32_0 = arith.constant 0 : i32
    return %arg0, %c0_i32 : i32, i32
  }
}

</mosaic_0001>

<bundles_post_ra>
// kernel: tpu_custom_call.1
= control target key start
LH: loop header
LB: loop body
LE: loop exit
PB: predicated region body
PF: predicated region fallthrough
CT: control target
= control target key end

     0   :  { %s5668_s0 = inlined_call_operand.hbm [shape: bf16[256,256], index: 0, kind: input, shape index: {}]   ;;  %s5669_s1 = inlined_call_operand.hbm [shape: bf16[256,512], index: 1, kind: input, shape index: {}]   ;;  %s5670_s2 = inlined_call_operand.hbm [shape: bf16[256,512], index: 2, kind: input, shape index: {}]   ;;  %s5671_s3 = inlined_call_operand.hbm [shape: bf16[512,256], index: 3, kind: input, shape index: {}]   ;;  %s5672_s4 = inlined_call_operand.hbm [shape: bf16[256,256], index: 4, kind: output, shape index: {}]  }
   0x1   :  { %5701 = sst [smem:[#allocation54_spill]] %s5668_s0 }
   0x2   :  { %5702 = sst [smem:[#allocation55_spill]] %s5669_s1 }
   0x3   :  { %5703 = sst [smem:[#allocation56_spill]] %s5670_s2 }
   0x4   :  { %5704 = sst [smem:[#allocation57_spill]] %s5672_s4 }
   0x5   :  { %9 = vsyncpa [#allocation4], 0 }
   0x6   :  { %11 = vsyncpa [#allocation4 + $0x1], 0 }
   0x7   :  { %12 = vsyncpa [#allocation7], 0 }
   0x8   :  { %14 = vsyncpa [#allocation7 + $0x1], 0 }
   0x9   :  { %15 = vsyncpa [#allocation10], 0 }
   0xa   :  { %17 = vsyncpa [#allocation10 + $0x1], 0 }
   0xb   :  { %18 = vsyncpa [#allocation5], 0 }
   0xc   :  { %20 = vsyncpa [#allocation5 + $0x1], 0  ;;  %s3841_s15 = smov 0   ;;  %s3843_s16 = smov 0  }
   0xd   :  { %s3845_s17 = smov 0   ;;  %s3847_s18 = smov 0  }
   0xe   :  { %s3849_s19 = smov 0   ;;  %s3851_s20 = smov 0  }
   0xf   :  { %s3853_s21 = smov 0   ;;  %s3855_s22 = smov 0  }
  0x10   :  { %s3857_s23 = smov 0   ;;  %s3859_s24 = smov 0  }
  0x11   :  { %s3861_s25 = smov 0  }
  0x12 LB: > { %5705 = sst [smem:[#allocation16_spill]] %s3780_s18  ;;  %s35_s26 = sadd.s32 1, %s3800_s23  ;;  %s3808_s25 = sphi %s3861_s25, %s26_s25   ;;  %s3804_s24 = sphi %s3859_s24, %s5892_s24   ;;  %s3800_s23 = sphi %s3857_s23, %s5899_s23   ;;  %s3796_s22 = sphi %s3855_s22, %s5890_s22   ;;  %s3792_s21 = sphi %s3853_s21, %s5898_s21   ;;  %s3788_s20 = sphi %s3851_s20, %s5889_s20   ;;  %s3784_s19 = sphi %s3849_s19, %s5897_s19   ;;  %s3780_s18 = sphi %s3847_s18, %s5896_s18   ;;  %s3776_s17 = sphi %s3845_s17, %s5895_s17   ;;  %s3772_s16 = sphi %s3843_s16, %s5894_s16   ;;  %s3768_s15 = sphi %s3841_s15, %s5893_s15  }
  0x13   : > { %5706 = sst [smem:[#allocation17_spill]] %s3788_s20  ;;  %p53_p0 = scmp.eq.s32.totalorder %s3808_s25, 0 }
  0x14   : > { %5707 = sst [smem:[#allocation18_spill]] %s3796_s22  ;;  %p3898_p1 = scmp.ge.s32.totalorder %s35_s26, 2 }
  0x15   : > { %5708 = sst [smem:[#allocation19_spill]] %s3804_s24  ;;  %s71_s28 = sadd.s32 1, %s3776_s17 }
  0x16   : > { %p78_p2 = scmp.ne.s32.totalorder %s3776_s17, %s3772_s16  ;;  %p84_p3 = scmp.ne.s32.totalorder %s3772_s16, %s3768_s15 }
  0x17   : > { %s5901_s26 = smov (%p3898_p1, %s35_s26), 0  ;;  %p3334_p5 = scmp.lt.s32.totalorder %s3808_s25, 4 }
  0x18   : > { %5710 = sst [smem:[#allocation20_spill]] %s5901_s26  ;;  %p3913_p4 = por %p78_p2, %p53_p0 }
  0x19   : > { %s68_s30 = ssub.s32 %s3800_s23, %s5901_s26  ;;  %s209_s5 = sand.u32 1, %s3808_s25  }
  0x1a   : > { %p69_p6 = scmp.eq.s32.totalorder %s68_s30, 0  ;;  %s5674_s7 = sand.u32 1, %s3776_s17  }
  0x1b   : > { %s3927_s8 = sshll.u32 %s5674_s7, 8  ;;  %s3189_s9 = sshll.u32 %s3800_s23, 3 }
  0x1c   : > { %s3922_s6 = scalar_select %p69_p6, %s3776_s17, %s71_s28  }
  0x1d   : > { %s5713_s1 = sld [smem:[#allocation55_spill]]  ;;  %s213_s14 = scalar_lea.vmem [#allocation6], %s3927_s8 }
  0x1e   : > { %5712 = sst [smem:[#allocation21_spill]] %s3922_s6  ;;  %s221_s26 = sshll.u32 %s213_s14, 4  ;;  %s222_s26 = int_to_ptr.vmem [resolvable:$true] %s221_s26 }
  0x1f   : > { %p3938_p7 = pnand %p3334_p5, %p3913_p4  ;;  %s5715_s2 = sld [smem:[#allocation56_spill]] }
  0x20   : > { %p2693_p8 = scmp.ge.s32.totalorder %s3808_s25, 1  ;;  %s3946_s29 = scalar_lea.sflag [#allocation7], %s209_s5 }
  0x21   : > { %s5675_s14 = smov 256   ;;  %s5676_s7 = smov 128  }
  0x22   : > { %p274_p9 = scmp.lt.s32.totalorder %s3808_s25, 5  ;;  %s2676_s30 = sadd.s32 4294967294, %s3808_s25  }
  0x23   : > { %s218_s12 = scalar_lea.hbm %s5713_s1, %s3189_s9  ;;  %s5678_s1 = smov 8  }
  0x24   : > { %s219_s13 = sshll.u32 %s218_s12, 4  ;;  %p3957_p10 = pnand %p2693_p8, %p274_p9  ;;  %s220_s13 = int_to_ptr.hbm [resolvable:$true] %s219_s13 }
  0x25   : > { %s240_s11 = scalar_lea.hbm %s5715_s2, %s3189_s9  ;;  %s3962_s9 = sadd.s32 4294967295, %s3808_s25  }
  0x26   : > { %s241_s12 = sshll.u32 %s240_s11, 4  ;;  %s38_s10 = sadd.s32 1, %s3804_s24  ;;  %s3954_s12 = int_to_ptr.hbm [resolvable:$true] %s241_s12 }
  0x27   : > { %3323 = dma.hbm_to_vmem [thread:$0]  (!%p3938_p7), %s220_s13, 4096, %s222_s26, %s3946_s29, %s5675_s14, %s5676_s7, %s5678_s1  }
  0x28   : > { %s5903_s10 = smov (!%p3898_p1, %s38_s10), %s3804_s24  ;;  %s45_s26 = sadd.s32 1, %s3788_s20 }
  0x29   : > { %p52_p11 = scmp.ne.s32.totalorder %s3788_s20, %s3784_s19  ;;  %p40_p12 = scmp.ge.s32.totalorder %s5903_s10, 2 }
  0x2a   : > { %p58_p13 = scmp.ne.s32.totalorder %s3784_s19, %s3780_s18  ;;  %p59_p4 = scmp.eq.s32.totalorder %s3962_s9, 0 }
  0x2b   : > { %p3976_p2 = por %p53_p0, %p52_p11  ;;  %s5905_s10 = smov (%p40_p12, %s5903_s10), 0 }
  0x2c   : > { %5718 = sst [smem:[#allocation22_spill]] %s5905_s10  ;;  %p3986_p6 = por %p59_p4, %p58_p13 }
  0x2d   : > { %p3993_p1 = por %p84_p3, %p59_p4  ;;  %s42_s14 = ssub.s32 %s3804_s24, %s5905_s10 }
  0x2e   : > { %p160_p0 = scmp.eq.s32.totalorder %s3962_s9, 3  ;;  %p43_p8 = scmp.eq.s32.totalorder %s42_s14, 0 }
  0x2f   : > { %p166_p9 = scmp.eq.s32.totalorder %s2676_s30, 3  ;;  %s186_s1 = sand.u32 1, %s3788_s20  }
  0x30   : > { %p4000_p12 = por %p160_p0, %p52_p11  ;;  %s2679_s10 = sshll.u32 %s186_s1, 7 }
  0x31   : > { %s4006_s2 = scalar_select %p43_p8, %s3788_s20, %s45_s26  }
  0x32   : > { %s5721_s7 = scalar_select %p4000_p12, 1, 0 }
  0x33   : > { %5723 = sst [smem:[#allocation24_spill]] %s4006_s2  ;;  %p4011_p3 = por %p166_p9, %p58_p13 }
  0x34   : > { %5722 = sst [smem:[#allocation23_spill]] %s5721_s7  ;;  %s3188_s6 = sshll.u32 %s3804_s24, 7 }
  0x35   : > { %s5724_s15 = scalar_select %p4011_p3, 1, 0 }
  0x36   : > { %s5726_s0 = sld [smem:[#allocation54_spill]]  ;;  %s190_s22 = scalar_lea.vmem [#allocation3], %s2679_s10 }
  0x37   : > { %5725 = sst [smem:[#allocation25_spill]] %s5724_s15  ;;  %s199_s26 = sshll.u32 %s190_s22, 4  ;;  %s200_s26 = int_to_ptr.vmem [resolvable:$true] %s199_s26 }
  0x38   : > { %p3318_p11 = pnand %p3334_p5, %p3976_p2  ;;  %s235_s2 = scalar_lea.vmem [#allocation8], %s3927_s8 }
  0x39   : > { %s243_s20 = sshll.u32 %s235_s2, 4  ;;  %s187_s15 = scalar_lea.sflag [#allocation4], %s186_s1  ;;  %s244_s20 = int_to_ptr.vmem [resolvable:$true] %s243_s20 }
  0x3a   : > { %s5727_s24 = smov 8   ;;  %s5728_s18 = smov 128  }
  0x3b   : > { %s3192_s22 = sshll.u32 %s3800_s23, 8  ;;  %s257_s14 = scalar_lea.vmem [#allocation9], %s3927_s8 }
  0x3c   : > { %s196_s4 = scalar_lea.hbm %s5726_s0, %s3188_s6  ;;  %s263_s13 = scalar_lea.hbm %s5671_s3, %s3192_s22 }
  0x3d   : > { %s197_s7 = sshll.u32 %s196_s4, 4  ;;  %s5729_s4 = smov 256   ;;  %s198_s7 = int_to_ptr.hbm [resolvable:$true] %s197_s7 }
  0x3e   : > { %3320 = dma.hbm_to_vmem [thread:$0]  (!%p3318_p11), %s198_s7, 2048, %s200_s26, %s187_s15, %s5728_s18, %s5728_s18, %s5727_s24  }
  0x3f   : > { %3326 = dma.hbm_to_vmem [thread:$0]  (!%p3938_p7), %s3954_s12, 4096, %s244_s20, %s3946_s29, %s5729_s4, %s5728_s18, %s5727_s24  }
  0x40   : > { %s266_s30 = sshll.u32 %s257_s14, 4  ;;  %s264_s0 = sshll.u32 %s263_s13, 4  ;;  %s267_s30 = int_to_ptr.vmem [resolvable:$true] %s266_s30  ;;  %s265_s0 = int_to_ptr.hbm [resolvable:$true] %s264_s0 }
  0x41   : > { %s5730_s1 = sand.u32 1, %s3776_s17   ;;  %278 = sbr.rel (%p3957_p10) target bundleno = 742 (0x2e6), region = 36 }
  0x42   : > { %s254_s2 = scalar_lea.sflag [#allocation10], %s5730_s1 }
  0x43   : > { %3329 = dma.hbm_to_vmem [thread:$0]  (!%p3938_p7), %s265_s0, 4096, %s267_s30, %s254_s2, %s5728_s18, %s5728_s18, %s5727_s24  }
  0x46   : > { %s4049_s20 = sand.u32 1, %s3784_s19  }
  0x47   : > { %s2694_s7 = sshll.u32 %s4049_s20, 7  ;;  %s281_s8 = scalar_lea.sflag [#allocation4], %s4049_s20 }
  0x48   : > { %s4053_s12 = scalar_lea.vmem [#allocation3], %s2694_s7 }
  0x49   : > { %3751 = dma.done.wait (%p3986_p6), %s281_s8, 2048  }
  0x4a   : > { %3753 = vsyncadd (%p3986_p6), %s281_s8, 4294965248  ;;  %s290_s0 = sand.u32 1, %s3962_s9   ;;  %s292_s18 = sand.u32 1, %s3772_s16  }
  0x4b   : > { %s2695_s24 = sshll.u32 %s292_s18, 8  ;;  %s291_s28 = scalar_lea.sflag [#allocation7], %s290_s0 }
  0x4c   : > { %s4061_s29 = scalar_lea.vmem [#allocation6], %s2695_s24 }
  0x4d   : > { %3755 = dma.done.wait (%p3993_p1), %s291_s28, 8192  }
  0x4e   : > { %3757 = vsyncadd (%p3993_p1), %s291_s28, 4294959104  ;;  %s4067_s5 = scalar_lea.vmem [#allocation8], %s2695_s24  ;;  %s311_s15 = scalar_lea.sflag [#allocation10], %s292_s18 }
  0x4f   : > { %s4069_s27 = scalar_lea.vmem [#allocation9], %s2695_s24 }
  0x50   : > { %3759 = dma.done.wait (%p3993_p1), %s311_s15, 4096  }
  0x51   : > { %3761 = vsyncadd (%p3993_p1), %s311_s15, 4294963200  ;;  %s4075_s9 = scalar_lea.vmem [#allocation11], %s2694_s7  ;;  %p2699_p5 = scmp.ne.s32.totalorder %s3792_s21, 0 }
  0x53   : > { %363 = sbr.rel (%p2699_p5) target bundleno = 121 (0x79), region = 56 }
  0x58   : > { %v3813_v0 = vmov 0.0  }
  0x59   : > { %364 = vst [vmem:[#allocation2 + $0xb0] sm:$0xff] %v3813_v0 }
  0x5a   : > { %365 = vst [vmem:[#allocation2] sm:$0xff] %v3813_v0 }
  0x5b   : > { %366 = vst [vmem:[#allocation2 + $0xd8] sm:$0xff] %v3813_v0 }
  0x5c   : > { %367 = vst [vmem:[#allocation2 + $0x18] sm:$0xff] %v3813_v0 }
  0x5d   : > { %368 = vst [vmem:[#allocation2 + $0x50] sm:$0xff] %v3813_v0 }
  0x5e   : > { %369 = vst [vmem:[#allocation2 + $0x68] sm:$0xff] %v3813_v0 }
  0x5f   : > { %370 = vst [vmem:[#allocation2 + $0x30] sm:$0xff] %v3813_v0 }
  0x60   : > { %371 = vst [vmem:[#allocation2 + $0x48] sm:$0xff] %v3813_v0 }
  0x61   : > { %372 = vst [vmem:[#allocation2 + $0x80] sm:$0xff] %v3813_v0 }
  0x62   : > { %373 = vst [vmem:[#allocation2 + $0x88] sm:$0xff] %v3813_v0 }
  0x63   : > { %374 = vst [vmem:[#allocation2 + $0xe8] sm:$0xff] %v3813_v0 }
  0x64   : > { %375 = vst [vmem:[#allocation2 + $0xb8] sm:$0xff] %v3813_v0 }
  0x65   : > { %376 = vst [vmem:[#allocation2 + $0x60] sm:$0xff] %v3813_v0 }
  0x66   : > { %377 = vst [vmem:[#allocation2 + $0xf0] sm:$0xff] %v3813_v0 }
  0x67   : > { %378 = vst [vmem:[#allocation2 + $0x8] sm:$0xff] %v3813_v0 }
  0x68   : > { %379 = vst [vmem:[#allocation2 + $0x78] sm:$0xff] %v3813_v0 }
  0x69   : > { %380 = vst [vmem:[#allocation2 + $0x38] sm:$0xff] %v3813_v0 }
  0x6a   : > { %381 = vst [vmem:[#allocation2 + $0x58] sm:$0xff] %v3813_v0 }
  0x6b   : > { %382 = vst [vmem:[#allocation2 + $0x40] sm:$0xff] %v3813_v0 }
  0x6c   : > { %383 = vst [vmem:[#allocation2 + $0xc8] sm:$0xff] %v3813_v0 }
  0x6d   : > { %384 = vst [vmem:[#allocation2 + $0xe0] sm:$0xff] %v3813_v0 }
  0x6e   : > { %385 = vst [vmem:[#allocation2 + $0x90] sm:$0xff] %v3813_v0 }
  0x6f   : > { %386 = vst [vmem:[#allocation2 + $0x70] sm:$0xff] %v3813_v0 }
  0x70   : > { %387 = vst [vmem:[#allocation2 + $0xc0] sm:$0xff] %v3813_v0 }
  0x71   : > { %388 = vst [vmem:[#allocation2 + $0xa8] sm:$0xff] %v3813_v0 }
  0x72   : > { %389 = vst [vmem:[#allocation2 + $0xd0] sm:$0xff] %v3813_v0 }
  0x73   : > { %390 = vst [vmem:[#allocation2 + $0x10] sm:$0xff] %v3813_v0 }
  0x74   : > { %391 = vst [vmem:[#allocation2 + $0x28] sm:$0xff] %v3813_v0 }
  0x75   : > { %392 = vst [vmem:[#allocation2 + $0xa0] sm:$0xff] %v3813_v0 }
  0x76   : > { %393 = vst [vmem:[#allocation2 + $0xf8] sm:$0xff] %v3813_v0 }
  0x77   : > { %394 = vst [vmem:[#allocation2 + $0x20] sm:$0xff] %v3813_v0 }
  0x78   : > { %395 = vst [vmem:[#allocation2 + $0x98] sm:$0xff] %v3813_v0 }
  0x79 PF: > { %v2822_v1 = vld [vmem:[%s4061_s29 + $0x70] sm:$0xf]  ;;  %v3224_v2 = vld [vmem:[%s4061_s29 + $0x74] sm:$0xf0]  ;;  %v3223_v6 = vld [vmem:[%s4061_s29 + $0x74] sm:$0xf] }
  0x7a   : > { %v2886_v3 = vld [vmem:[%s4061_s29 + $0xf0] sm:$0xf]  ;;  %v2823_v4 = vor.u32 %v3224_v2, %v2822_v1  ;;  %v3240_v5 = vld [vmem:[%s4061_s29 + $0xf4] sm:$0xf0]  ;;  %v2824_v7 = vld [vmem:[%s4061_s29 + $0x78] sm:$0xf0] }
  0x7b   : > { %v2887_v8 = vor.u32 %v3240_v5, %v2886_v3  ;;  %v2827_v9 = vor.u32 %v3223_v6, %v2824_v7  ;;  %v3239_v10 = vld [vmem:[%s4061_s29 + $0xf4] sm:$0xf]  ;;  %v2888_v11 = vld [vmem:[%s4061_s29 + $0xf8] sm:$0xf0]  ;;  %v2814_v12 = vld [vmem:[%s4061_s29 + $0x60] sm:$0xf] }
  0x7c   : > { %684 = vmatpush.bf16.msra.mxu0 %v2823_v4  ;;  %v2891_v13 = vor.u32 %v3239_v10, %v2888_v11  ;;  %v3222_v14 = vld [vmem:[%s4061_s29 + $0x64] sm:$0xf0]  ;;  %v2878_v15 = vld [vmem:[%s4061_s29 + $0xe0] sm:$0xf]  ;;  %v3221_v19 = vld [vmem:[%s4061_s29 + $0x64] sm:$0xf] }
  0x7d   : > { %v3238_v16 = vld [vmem:[%s4061_s29 + $0xe4] sm:$0xf0]  ;;  %733 = vmatpush.bf16.msra.mxu1 %v2887_v8  ;;  %782 = vmatpush.bf16.msra.mxu2 %v2827_v9  ;;  %v2815_v17 = vor.u32 %v3222_v14, %v2814_v12  ;;  %v2816_v20 = vld [vmem:[%s4061_s29 + $0x68] sm:$0xf0]  ;;  %v3237_v21 = vld [vmem:[%s4061_s29 + $0xe4] sm:$0xf] }
  0x7e   : > { %v2879_v18 = vor.u32 %v3238_v16, %v2878_v15  ;;  %831 = vmatpush.bf16.msra.mxu3 %v2891_v13  ;;  %v2819_v22 = vor.u32 %v3221_v19, %v2816_v20  ;;  %v2880_v23 = vld [vmem:[%s4061_s29 + $0xe8] sm:$0xf0]  ;;  %v2806_v24 = vld [vmem:[%s4061_s29 + $0x50] sm:$0xf]  ;;  %v3220_v25 = vld [vmem:[%s4061_s29 + $0x54] sm:$0xf0] }
  0x7f   : > { %v2883_v26 = vor.u32 %v3237_v21, %v2880_v23  ;;  %v2870_v27 = vld [vmem:[%s4061_s29 + $0xd0] sm:$0xf]  ;;  %v3236_v28 = vld [vmem:[%s4061_s29 + $0xd4] sm:$0xf0]  ;;  %v3219_v29 = vld [vmem:[%s4061_s29 + $0x54] sm:$0xf]  ;;  %v2807_v30 = vor.u32 %v3220_v25, %v2806_v24 }
  0x80   : > { %685 = vmatpush.bf16.msra.mxu0 %v2815_v17  ;;  %v2808_v31 = vld [vmem:[%s4061_s29 + $0x58] sm:$0xf0]  ;;  %v3235_v32 = vld [vmem:[%s4061_s29 + $0xd4] sm:$0xf]  ;;  %v2871_v34 = vor.u32 %v3236_v28, %v2870_v27  ;;  %v2798_v36 = vld [vmem:[%s4061_s29 + $0x40] sm:$0xf] }
  0x81   : > { %v2872_v33 = vld [vmem:[%s4061_s29 + $0xd8] sm:$0xf0]  ;;  %734 = vmatpush.bf16.msra.mxu1 %v2879_v18  ;;  %783 = vmatpush.bf16.msra.mxu2 %v2819_v22  ;;  %v2811_v35 = vor.u32 %v3219_v29, %v2808_v31  ;;  %v3218_v37 = vld [vmem:[%s4061_s29 + $0x44] sm:$0xf0]  ;;  %v2862_v38 = vld [vmem:[%s4061_s29 + $0xc0] sm:$0xf] }
  0x82   : > { %832 = vmatpush.bf16.msra.mxu3 %v2883_v26  ;;  %v2875_v39 = vor.u32 %v3235_v32, %v2872_v33  ;;  %v3234_v40 = vld [vmem:[%s4061_s29 + $0xc4] sm:$0xf0]  ;;  %v3217_v41 = vld [vmem:[%s4061_s29 + $0x44] sm:$0xf]  ;;  %v2800_v42 = vld [vmem:[%s4061_s29 + $0x48] sm:$0xf0]  ;;  %v2799_v45 = vor.u32 %v3218_v37, %v2798_v36 }
  0x83   : > { %v3233_v43 = vld [vmem:[%s4061_s29 + $0xc4] sm:$0xf]  ;;  %v2864_v44 = vld [vmem:[%s4061_s29 + $0xc8] sm:$0xf0]  ;;  %v2863_v46 = vor.u32 %v3234_v40, %v2862_v38  ;;  %v2803_v47 = vor.u32 %v3217_v41, %v2800_v42  ;;  %v2790_v48 = vld [vmem:[%s4061_s29 + $0x30] sm:$0xf] }
  0x84   : > { %686 = vmatpush.bf16.msra.mxu0 %v2807_v30  ;;  %v3216_v49 = vld [vmem:[%s4061_s29 + $0x34] sm:$0xf0]  ;;  %v2854_v50 = vld [vmem:[%s4061_s29 + $0xb0] sm:$0xf]  ;;  %v2867_v51 = vor.u32 %v3233_v43, %v2864_v44  ;;  %v3215_v53 = vld [vmem:[%s4061_s29 + $0x34] sm:$0xf] }
  0x85   : > { %735 = vmatpush.bf16.msra.mxu1 %v2871_v34  ;;  %784 = vmatpush.bf16.msra.mxu2 %v2811_v35  ;;  %v3232_v52 = vld [vmem:[%s4061_s29 + $0xb4] sm:$0xf0]  ;;  %v2792_v54 = vld [vmem:[%s4061_s29 + $0x38] sm:$0xf0]  ;;  %v3231_v55 = vld [vmem:[%s4061_s29 + $0xb4] sm:$0xf]  ;;  %v2791_v57 = vor.u32 %v3216_v49, %v2790_v48 }
  0x86   : > { %833 = vmatpush.bf16.msra.mxu3 %v2875_v39  ;;  %v2856_v56 = vld [vmem:[%s4061_s29 + $0xb8] sm:$0xf0]  ;;  %v2855_v58 = vor.u32 %v3232_v52, %v2854_v50  ;;  %v2795_v59 = vor.u32 %v3215_v53, %v2792_v54  ;;  %v2782_v60 = vld [vmem:[%s4061_s29 + $0x20] sm:$0xf]  ;;  %v3214_v61 = vld [vmem:[%s4061_s29 + $0x24] sm:$0xf0] }
  0x87   : > { %v2846_v62 = vld [vmem:[%s4061_s29 + $0xa0] sm:$0xf]  ;;  %v2859_v63 = vor.u32 %v3231_v55, %v2856_v56  ;;  %v3230_v0 = vld [vmem:[%s4061_s29 + $0xa4] sm:$0xf0]  ;;  %v3213_v1 = vld [vmem:[%s4061_s29 + $0x24] sm:$0xf]  ;;  %v2783_v5 = vor.u32 %v3214_v61, %v2782_v60 }
  0x88   : > { %687 = vmatpush.bf16.msra.mxu0 %v2799_v45  ;;  %v2784_v2 = vld [vmem:[%s4061_s29 + $0x28] sm:$0xf0]  ;;  %v3229_v3 = vld [vmem:[%s4061_s29 + $0xa4] sm:$0xf]  ;;  %v2847_v6 = vor.u32 %v3230_v0, %v2846_v62  ;;  %v2774_v8 = vld [vmem:[%s4061_s29 + $0x10] sm:$0xf] }
  0x89   : > { %736 = vmatpush.bf16.msra.mxu1 %v2863_v46  ;;  %785 = vmatpush.bf16.msra.mxu2 %v2803_v47  ;;  %v2848_v4 = vld [vmem:[%s4061_s29 + $0xa8] sm:$0xf0]  ;;  %v2787_v7 = vor.u32 %v3213_v1, %v2784_v2  ;;  %v3212_v9 = vld [vmem:[%s4061_s29 + $0x14] sm:$0xf0]  ;;  %v2838_v10 = vld [vmem:[%s4061_s29 + $0x90] sm:$0xf] }
  0x8a   : > { %834 = vmatpush.bf16.msra.mxu3 %v2867_v51  ;;  %v2851_v11 = vor.u32 %v3229_v3, %v2848_v4  ;;  %v3228_v12 = vld [vmem:[%s4061_s29 + $0x94] sm:$0xf0]  ;;  %v3211_v13 = vld [vmem:[%s4061_s29 + $0x14] sm:$0xf]  ;;  %v2776_v14 = vld [vmem:[%s4061_s29 + $0x18] sm:$0xf0]  ;;  %v2775_v17 = vor.u32 %v3212_v9, %v2774_v8 }
  0x8b   : > { %v3227_v15 = vld [vmem:[%s4061_s29 + $0x94] sm:$0xf]  ;;  %v2840_v16 = vld [vmem:[%s4061_s29 + $0x98] sm:$0xf0]  ;;  %v2766_v18 = vld [vmem:[%s4061_s29] sm:$0xf]  ;;  %v2839_v20 = vor.u32 %v3228_v12, %v2838_v10  ;;  %v2779_v21 = vor.u32 %v3211_v13, %v2776_v14 }
  0x8c   : > { %688 = vmatpush.bf16.msra.mxu0 %v2791_v57  ;;  %v3210_v19 = vld [vmem:[%s4061_s29 + $0x4] sm:$0xf0]  ;;  %v2830_v22 = vld [vmem:[%s4061_s29 + $0x80] sm:$0xf]  ;;  %v3209_v24 = vld [vmem:[%s4061_s29 + $0x4] sm:$0xf]  ;;  %v2843_v25 = vor.u32 %v3227_v15, %v2840_v16 }
  0x8d   : > { %737 = vmatpush.bf16.msra.mxu1 %v2855_v58  ;;  %786 = vmatpush.bf16.msra.mxu2 %v2795_v59  ;;  %v3226_v23 = vld [vmem:[%s4061_s29 + $0x84] sm:$0xf0]  ;;  %v2768_v26 = vld [vmem:[%s4061_s29 + $0x8] sm:$0xf0]  ;;  %v3225_v27 = vld [vmem:[%s4061_s29 + $0x84] sm:$0xf]  ;;  %v2767_v32 = vor.u32 %v3210_v19, %v2766_v18 }
  0x8e   : > { %835 = vmatpush.bf16.msra.mxu3 %v2859_v63  ;;  %v2832_v28 = vld [vmem:[%s4061_s29 + $0x88] sm:$0xf0]  ;;  %v2702_v29 = vld [vmem:[%s4053_s12] sm:$0xf]  ;;  %v3255_v30 = vld [vmem:[%s4067_s5 + $0x74] sm:$0xf]  ;;  %v2831_v36 = vor.u32 %v3226_v23, %v2830_v22  ;;  %v2771_v37 = vor.u32 %v3209_v24, %v2768_v26 }
  0x8f   : > { %v2952_v31 = vld [vmem:[%s4067_s5 + $0x78] sm:$0xf0]  ;;  %v3194_v33 = vld [vmem:[%s4053_s12 + $0x4] sm:$0xf0]  ;;  %v3271_v34 = vld [vmem:[%s4067_s5 + $0xf4] sm:$0xf]  ;;  %v2835_v40 = vor.u32 %v3225_v27, %v2832_v28 }
  0x90   : > { %689 = vmatpush.bf16.msra.mxu0 %v2783_v5  ;;  %v3016_v35 = vld [vmem:[%s4067_s5 + $0xf8] sm:$0xf0]  ;;  %v3193_v38 = vld [vmem:[%s4053_s12 + $0x4] sm:$0xf]  ;;  %v2704_v39 = vld [vmem:[%s4053_s12 + $0x8] sm:$0xf0]  ;;  %v2955_v41 = vor.u32 %v3255_v30, %v2952_v31  ;;  %v4153_v45 = vor.u32 %v3194_v33, %v2702_v29 }
  0x91   : > { %738 = vmatpush.bf16.msra.mxu1 %v2847_v6  ;;  %787 = vmatpush.bf16.msra.mxu2 %v2787_v7  ;;  %v2950_v42 = vld [vmem:[%s4067_s5 + $0x70] sm:$0xf]  ;;  %v3256_v43 = vld [vmem:[%s4067_s5 + $0x74] sm:$0xf0]  ;;  %v3019_v46 = vor.u32 %v3271_v34, %v3016_v35  ;;  %v3253_v48 = vld [vmem:[%s4067_s5 + $0x64] sm:$0xf]  ;;  %v4158_v50 = vor.u32 %v3193_v38, %v2704_v39 }
  0x92   : > { %836 = vmatpush.bf16.msra.mxu3 %v2851_v11  ;;  %v3014_v44 = vld [vmem:[%s4067_s5 + $0xf0] sm:$0xf]  ;;  %v3272_v47 = vld [vmem:[%s4067_s5 + $0xf4] sm:$0xf0]  ;;  %v2944_v49 = vld [vmem:[%s4067_s5 + $0x68] sm:$0xf0]  ;;  %v2951_v53 = vor.u32 %v3256_v43, %v2950_v42 }
  0x93   : > { %v3269_v51 = vld [vmem:[%s4067_s5 + $0xe4] sm:$0xf]  ;;  %v3008_v52 = vld [vmem:[%s4067_s5 + $0xe8] sm:$0xf0]  ;;  %v3015_v54 = vor.u32 %v3272_v47, %v3014_v44  ;;  %v2947_v55 = vor.u32 %v3253_v48, %v2944_v49  ;;  %v2942_v56 = vld [vmem:[%s4067_s5 + $0x60] sm:$0xf] }
  0x94   : > { %690 = vmatpush.bf16.msra.mxu0 %v2775_v17  ;;  %v3254_v57 = vld [vmem:[%s4067_s5 + $0x64] sm:$0xf0]  ;;  %v3011_v58 = vor.u32 %v3269_v51, %v3008_v52  ;;  %v3006_v59 = vld [vmem:[%s4067_s5 + $0xe0] sm:$0xf]  ;;  %v3251_v62 = vld [vmem:[%s4067_s5 + $0x54] sm:$0xf] }
  0x95   : > { %739 = vmatpush.bf16.msra.mxu1 %v2839_v20  ;;  %788 = vmatpush.bf16.msra.mxu2 %v2779_v21  ;;  %v3270_v60 = vld [vmem:[%s4067_s5 + $0xe4] sm:$0xf0]  ;;  %v2943_v61 = vor.u32 %v3254_v57, %v2942_v56  ;;  %v2936_v63 = vld [vmem:[%s4067_s5 + $0x58] sm:$0xf0]  ;;  %v3267_v0 = vld [vmem:[%s4067_s5 + $0xd4] sm:$0xf] }
  0x96   : > { %837 = vmatpush.bf16.msra.mxu3 %v2843_v25  ;;  %v3007_v1 = vor.u32 %v3270_v60, %v3006_v59  ;;  %v2939_v2 = vor.u32 %v3251_v62, %v2936_v63  ;;  %v3000_v3 = vld [vmem:[%s4067_s5 + $0xd8] sm:$0xf0]  ;;  %v2934_v4 = vld [vmem:[%s4067_s5 + $0x50] sm:$0xf]  ;;  %v3252_v5 = vld [vmem:[%s4067_s5 + $0x54] sm:$0xf0] }
  0x97   : > { %v3003_v6 = vor.u32 %v3267_v0, %v3000_v3  ;;  %v2998_v7 = vld [vmem:[%s4067_s5 + $0xd0] sm:$0xf]  ;;  %v3268_v8 = vld [vmem:[%s4067_s5 + $0xd4] sm:$0xf0]  ;;  %v2935_v9 = vor.u32 %v3252_v5, %v2934_v4  ;;  %v3195_v13 = vld [vmem:[%s4053_s12 + $0x14] sm:$0xf] }
  0x98   : > { %691 = vmatpush.bf16.msra.mxu0 %v2767_v32  ;;  %v2999_v10 = vor.u32 %v3268_v8, %v2998_v7  ;;  %v2710_v11 = vld [vmem:[%s4053_s12 + $0x10] sm:$0xf]  ;;  %v3196_v12 = vld [vmem:[%s4053_s12 + $0x14] sm:$0xf0]  ;;  %v2712_v14 = vld [vmem:[%s4053_s12 + $0x18] sm:$0xf0] }
  0x99   : > { %740 = vmatpush.bf16.msra.mxu1 %v2831_v36  ;;  %789 = vmatpush.bf16.msra.mxu2 %v2771_v37  ;;  %v4182_v15 = vor.u32 %v3196_v12, %v2710_v11  ;;  %v4184_v16 = vor.u32 %v3195_v13, %v2712_v14  ;;  %v3249_v17 = vld [vmem:[%s4067_s5 + $0x44] sm:$0xf]  ;;  %v2928_v18 = vld [vmem:[%s4067_s5 + $0x48] sm:$0xf0]  ;;  %v2926_v22 = vld [vmem:[%s4067_s5 + $0x40] sm:$0xf] }
  0x9a   : > { %838 = vmatpush.bf16.msra.mxu3 %v2835_v40  ;;  %v3265_v19 = vld [vmem:[%s4067_s5 + $0xc4] sm:$0xf]  ;;  %v2931_v20 = vor.u32 %v3249_v17, %v2928_v18  ;;  %v2992_v21 = vld [vmem:[%s4067_s5 + $0xc8] sm:$0xf0]  ;;  %v3250_v23 = vld [vmem:[%s4067_s5 + $0x44] sm:$0xf0] }
  0x9b   : > { %692 = vmatmul.bf16.vlgmr.msra.gmra.mxu0 %v4153_v45  ;;  %v2995_v24 = vor.u32 %v3265_v19, %v2992_v21  ;;  %v2927_v25 = vor.u32 %v3250_v23, %v2926_v22  ;;  %v2990_v26 = vld [vmem:[%s4067_s5 + $0xc0] sm:$0xf]  ;;  %v3266_v27 = vld [vmem:[%s4067_s5 + $0xc4] sm:$0xf0]  ;;  %v3197_v31 = vld [vmem:[%s4053_s12 + $0x24] sm:$0xf] }
  0x9c   : > { %741 = vmatmul.bf16.vlgmr.msra.gmra.mxu1 %v4158_v50  ;;  %790 = vmatmul.bf16.vlgmr.msra.gmra.mxu2 %v4153_v45  ;;  %v2991_v28 = vor.u32 %v3266_v27, %v2990_v26  ;;  %v2718_v29 = vld [vmem:[%s4053_s12 + $0x20] sm:$0xf]  ;;  %v3198_v30 = vld [vmem:[%s4053_s12 + $0x24] sm:$0xf0]  ;;  %v2720_v32 = vld [vmem:[%s4053_s12 + $0x28] sm:$0xf0] }
  0x9d   : > { %1170 = vmatpush.bf16.msrb.mxu2 %v2955_v41  ;;  %839 = vmatmul.bf16.vlgmr.msra.gmra.mxu3 %v4158_v50  ;;  %v4202_v33 = vor.u32 %v3198_v30, %v2718_v29  ;;  %v4204_v34 = vor.u32 %v3197_v31, %v2720_v32  ;;  %v3247_v35 = vld [vmem:[%s4067_s5 + $0x34] sm:$0xf]  ;;  %v2920_v36 = vld [vmem:[%s4067_s5 + $0x38] sm:$0xf0]  ;;  %v2918_v40 = vld [vmem:[%s4067_s5 + $0x30] sm:$0xf] }
  0x9e   : > { %1219 = vmatpush.bf16.msrb.mxu3 %v3019_v46  ;;  %1072 = vmatpush.bf16.msrb.mxu0 %v2951_v53  ;;  %v3263_v37 = vld [vmem:[%s4067_s5 + $0xb4] sm:$0xf]  ;;  %v2923_v38 = vor.u32 %v3247_v35, %v2920_v36  ;;  %v2984_v39 = vld [vmem:[%s4067_s5 + $0xb8] sm:$0xf0]  ;;  %v3248_v41 = vld [vmem:[%s4067_s5 + $0x34] sm:$0xf0] }
  0x9f   : > { %1121 = vmatpush.bf16.msrb.mxu1 %v3015_v54  ;;  %v2987_v42 = vor.u32 %v3263_v37, %v2984_v39  ;;  %v2919_v43 = vor.u32 %v3248_v41, %v2918_v40  ;;  %v2982_v44 = vld [vmem:[%s4067_s5 + $0xb0] sm:$0xf]  ;;  %v3264_v46 = vld [vmem:[%s4067_s5 + $0xb4] sm:$0xf0]  ;;  %v3199_v51 = vld [vmem:[%s4053_s12 + $0x34] sm:$0xf] }
  0xa0   : > { %v2983_v47 = vor.u32 %v3264_v46, %v2982_v44  ;;  %v2726_v48 = vld [vmem:[%s4053_s12 + $0x30] sm:$0xf]  ;;  %v3200_v49 = vld [vmem:[%s4053_s12 + $0x34] sm:$0xf0]  ;;  %v2728_v52 = vld [vmem:[%s4053_s12 + $0x38] sm:$0xf0] }
  0xa1   : > { %1171 = vmatpush.bf16.msrb.mxu2 %v2947_v55  ;;  %v4222_v53 = vor.u32 %v3200_v49, %v2726_v48  ;;  %v4224_v54 = vor.u32 %v3199_v51, %v2728_v52  ;;  %v3245_v55 = vld [vmem:[%s4067_s5 + $0x24] sm:$0xf]  ;;  %v2912_v56 = vld [vmem:[%s4067_s5 + $0x28] sm:$0xf0]  ;;  %v2910_v60 = vld [vmem:[%s4067_s5 + $0x20] sm:$0xf] }
  0xa2   : > { %1220 = vmatpush.bf16.msrb.mxu3 %v3011_v58  ;;  %1073 = vmatpush.bf16.msrb.mxu0 %v2943_v61  ;;  %v3261_v57 = vld [vmem:[%s4067_s5 + $0xa4] sm:$0xf]  ;;  %v2915_v58 = vor.u32 %v3245_v55, %v2912_v56  ;;  %v2976_v59 = vld [vmem:[%s4067_s5 + $0xa8] sm:$0xf0]  ;;  %v3246_v61 = vld [vmem:[%s4067_s5 + $0x24] sm:$0xf0] }
  0xa3   : > { %1122 = vmatpush.bf16.msrb.mxu1 %v3007_v1  ;;  %v2979_v62 = vor.u32 %v3261_v57, %v2976_v59  ;;  %v2911_v63 = vor.u32 %v3246_v61, %v2910_v60  ;;  %v2974_v0 = vld [vmem:[%s4067_s5 + $0xa0] sm:$0xf]  ;;  %v3262_v1 = vld [vmem:[%s4067_s5 + $0xa4] sm:$0xf0]  ;;  %v3201_v5 = vld [vmem:[%s4053_s12 + $0x44] sm:$0xf] }
  0xa4   : > { %v2734_v3 = vld [vmem:[%s4053_s12 + $0x40] sm:$0xf]  ;;  %v3202_v4 = vld [vmem:[%s4053_s12 + $0x44] sm:$0xf0]  ;;  %v3259_v11 = vld [vmem:[%s4067_s5 + $0x94] sm:$0xf] }
  0xa5   : > { %1172 = vmatpush.bf16.msrb.mxu2 %v2939_v2  ;;  %v2975_v2 = vor.u32 %v3262_v1, %v2974_v0  ;;  %v4242_v7 = vor.u32 %v3202_v4, %v2734_v3  ;;  %v2968_v13 = vld [vmem:[%s4067_s5 + $0x98] sm:$0xf0]  ;;  %v2902_v14 = vld [vmem:[%s4067_s5 + $0x10] sm:$0xf]  ;;  %v3244_v17 = vld [vmem:[%s4067_s5 + $0x14] sm:$0xf0] }
  0xa6   : > { %1221 = vmatpush.bf16.msrb.mxu3 %v3003_v6  ;;  %1074 = vmatpush.bf16.msrb.mxu0 %v2935_v9  ;;  %v2736_v6 = vld [vmem:[%s4053_s12 + $0x48] sm:$0xf0]  ;;  %v3243_v9 = vld [vmem:[%s4067_s5 + $0x14] sm:$0xf]  ;;  %v2971_v18 = vor.u32 %v3259_v11, %v2968_v13  ;;  %v2903_v19 = vor.u32 %v3244_v17, %v2902_v14  ;;  %v3260_v21 = vld [vmem:[%s4067_s5 + $0x94] sm:$0xf0] }
  0xa7   : > { %1123 = vmatpush.bf16.msrb.mxu1 %v2999_v10  ;;  %v4244_v8 = vor.u32 %v3201_v5, %v2736_v6  ;;  %v2904_v10 = vld [vmem:[%s4067_s5 + $0x18] sm:$0xf0]  ;;  %v2742_v23 = vld [vmem:[%s4053_s12 + $0x50] sm:$0xf]  ;;  %v3241_v29 = vld [vmem:[%s4067_s5 + $0x4] sm:$0xf] }
  0xa8   : > { %v2907_v12 = vor.u32 %v3243_v9, %v2904_v10  ;;  %v2744_v26 = vld [vmem:[%s4053_s12 + $0x58] sm:$0xf0]  ;;  %v2896_v30 = vld [vmem:[%s4067_s5 + $0x8] sm:$0xf0]  ;;  %v3257_v31 = vld [vmem:[%s4067_s5 + $0x84] sm:$0xf] }
  0xa9   : > { %1173 = vmatpush.bf16.msrb.mxu2 %v2931_v20  ;;  %v2966_v20 = vld [vmem:[%s4067_s5 + $0x90] sm:$0xf]  ;;  %v2899_v32 = vor.u32 %v3241_v29, %v2896_v30  ;;  %v2960_v35 = vld [vmem:[%s4067_s5 + $0x88] sm:$0xf0]  ;;  %v2894_v36 = vld [vmem:[%s4067_s5] sm:$0xf] }
  0xaa   : > { %1222 = vmatpush.bf16.msrb.mxu3 %v2995_v24  ;;  %1075 = vmatpush.bf16.msrb.mxu0 %v2927_v25  ;;  %v2967_v22 = vor.u32 %v3260_v21, %v2966_v20  ;;  %v3204_v24 = vld [vmem:[%s4053_s12 + $0x54] sm:$0xf0]  ;;  %v3203_v25 = vld [vmem:[%s4053_s12 + $0x54] sm:$0xf]  ;;  %v3242_v37 = vld [vmem:[%s4067_s5 + $0x4] sm:$0xf0] }
  0xab   : > { %697 = vmatmul.bf16.gmra.mxu0 %v4182_v15  ;;  %1124 = vmatpush.bf16.msrb.mxu1 %v2991_v28  ;;  %v4262_v27 = vor.u32 %v3204_v24, %v2742_v23  ;;  %v4264_v28 = vor.u32 %v3203_v25, %v2744_v26  ;;  %v2895_v39 = vor.u32 %v3242_v37, %v2894_v36  ;;  %v2958_v40 = vld [vmem:[%s4067_s5 + $0x80] sm:$0xf]  ;;  %v3258_v41 = vld [vmem:[%s4067_s5 + $0x84] sm:$0xf0]  ;;  %v3205_v46 = vld [vmem:[%s4053_s12 + $0x64] sm:$0xf] }
  0xac   : > { %746 = vmatmul.bf16.gmra.mxu1 %v4184_v16  ;;  %795 = vmatmul.bf16.gmra.mxu2 %v4182_v15  ;;  %v3206_v44 = vld [vmem:[%s4053_s12 + $0x64] sm:$0xf0]  ;;  %v2758_v51 = vld [vmem:[%s4053_s12 + $0x70] sm:$0xf]  ;;  %v3208_v52 = vld [vmem:[%s4053_s12 + $0x74] sm:$0xf0] }
  0xad   : > { %844 = vmatmul.bf16.gmra.mxu3 %v4184_v16  ;;  %1174 = vmatpush.bf16.msrb.mxu2 %v2923_v38  ;;  %v2963_v38 = vor.u32 %v3257_v31, %v2960_v35  ;;  %v3207_v55 = vld [vmem:[%s4053_s12 + $0x74] sm:$0xf]  ;;  %v2760_v56 = vld [vmem:[%s4053_s12 + $0x78] sm:$0xf0]  ;;  %v4294_v57 = vor.u32 %v3208_v52, %v2758_v51  ;;  %v3110_v24 = vld [vmem:[%s4069_s27 + $0x70] sm:$0xf] }
  0xae   : > { %1223 = vmatpush.bf16.msrb.mxu3 %v2987_v42  ;;  %1076 = vmatpush.bf16.msrb.mxu0 %v2919_v43  ;;  %v2959_v42 = vor.u32 %v3258_v41, %v2958_v40  ;;  %v2750_v43 = vld [vmem:[%s4053_s12 + $0x60] sm:$0xf]  ;;  %v3112_v11 = vld [vmem:[%s4069_s27 + $0x78] sm:$0xf0]  ;;  %v3303_v13 = vld [vmem:[%s4069_s27 + $0xf4] sm:$0xf] }
  0xaf   : > { %1125 = vmatpush.bf16.msrb.mxu1 %v2983_v47  ;;  %v2752_v47 = vld [vmem:[%s4053_s12 + $0x68] sm:$0xf0]  ;;  %v4282_v48 = vor.u32 %v3206_v44, %v2750_v43  ;;  %v3176_v14 = vld [vmem:[%s4069_s27 + $0xf8] sm:$0xf0]  ;;  %v3304_v26 = vld [vmem:[%s4069_s27 + $0xf4] sm:$0xf0] }
  0xb0   : > { %v4284_v49 = vor.u32 %v3205_v46, %v2752_v47  ;;  %v3179_v20 = vor.u32 %v3303_v13, %v3176_v14  ;;  %v3285_v41 = vld [vmem:[%s4069_s27 + $0x64] sm:$0xf]  ;;  %v3168_v46 = vld [vmem:[%s4069_s27 + $0xe8] sm:$0xf0]  ;;  %v3096_v14 = vld [vmem:[%s4069_s27 + $0x58] sm:$0xf0] }
  0xb1   : > { %1175 = vmatpush.bf16.msrb.mxu2 %v2915_v58  ;;  %v4296_v58 = vor.u32 %v3207_v55, %v2760_v56  ;;  %v3301_v44 = vld [vmem:[%s4069_s27 + $0xe4] sm:$0xf]  ;;  %p3180_p7 = scmp.ne.s32.totalorder %s3792_s21, 1 }
  0xb2   : > { %1224 = vmatpush.bf16.msrb.mxu3 %v2979_v62  ;;  %1077 = vmatpush.bf16.msrb.mxu0 %v2911_v63  ;;  %v3171_v51 = vor.u32 %v3301_v44, %v3168_v46 }
  0xb3   : > { %1126 = vmatpush.bf16.msrb.mxu1 %v2975_v2 }
  0xb5   : > { %1176 = vmatpush.bf16.msrb.mxu2 %v2907_v12 }
  0xb6   : > { %1225 = vmatpush.bf16.msrb.mxu3 %v2971_v18  ;;  %1078 = vmatpush.bf16.msrb.mxu0 %v2903_v19 }
  0xb7   : > { %1127 = vmatpush.bf16.msrb.mxu1 %v2967_v22 }
  0xb9   : > { %1177 = vmatpush.bf16.msrb.mxu2 %v2899_v32 }
  0xba   : > { %1226 = vmatpush.bf16.msrb.mxu3 %v2963_v38  ;;  %1079 = vmatpush.bf16.msrb.mxu0 %v2895_v39 }
  0xbb   : > { %702 = vmatmul.bf16.gmra.mxu0 %v4202_v33  ;;  %1128 = vmatpush.bf16.msrb.mxu1 %v2959_v42  ;;  %v3104_v42 = vld [vmem:[%s4069_s27 + $0x68] sm:$0xf0] }
  0xbc   : > { %751 = vmatmul.bf16.gmra.mxu1 %v4204_v34  ;;  %800 = vmatmul.bf16.gmra.mxu2 %v4202_v33  ;;  %v3107_v47 = vor.u32 %v3285_v41, %v3104_v42 }
  0xbd   : > { %849 = vmatmul.bf16.gmra.mxu3 %v4204_v34 }
  0xbe   : > { %2327 = vmatpush.bf16.msra.mxu3 %v3179_v20  ;;  %v3160_v20 = vld [vmem:[%s4069_s27 + $0xd8] sm:$0xf0] }
  0xc2   : > { %2328 = vmatpush.bf16.msra.mxu3 %v3171_v51  ;;  %v3088_v51 = vld [vmem:[%s4069_s27 + $0x48] sm:$0xf0] }
  0xcb   : > { %707 = vmatmul.bf16.gmra.mxu0 %v4222_v53 }
  0xcc   : > { %756 = vmatmul.bf16.gmra.mxu1 %v4224_v54  ;;  %805 = vmatmul.bf16.gmra.mxu2 %v4222_v53 }
  0xcd   : > { %854 = vmatmul.bf16.gmra.mxu3 %v4224_v54 }
  0xdb   : > { %712 = vmatmul.bf16.gmra.mxu0 %v4242_v7 }
  0xdc   : > { %761 = vmatmul.bf16.gmra.mxu1 %v4244_v8  ;;  %810 = vmatmul.bf16.gmra.mxu2 %v4242_v7 }
  0xdd   : > { %859 = vmatmul.bf16.gmra.mxu3 %v4244_v8 }
  0xeb   : > { %717 = vmatmul.bf16.gmra.mxu0 %v4262_v27 }
  0xec   : > { %766 = vmatmul.bf16.gmra.mxu1 %v4264_v28  ;;  %815 = vmatmul.bf16.gmra.mxu2 %v4262_v27 }
  0xed   : > { %864 = vmatmul.bf16.gmra.mxu3 %v4264_v28 }
  0xfb   : > { %722 = vmatmul.bf16.gmra.mxu0 %v4282_v48 }
  0xfc   : > { %771 = vmatmul.bf16.gmra.mxu1 %v4284_v49  ;;  %820 = vmatmul.bf16.gmra.mxu2 %v4282_v48 }
  0xfd   : > { %869 = vmatmul.bf16.gmra.mxu3 %v4284_v49 }
 0x10b   : > { %727 = vmatmul.bf16.gmra.mxu0 %v4294_v57 }
 0x10c   : > { %776 = vmatmul.bf16.gmra.mxu1 %v4296_v58  ;;  %825 = vmatmul.bf16.gmra.mxu2 %v4294_v57 }
 0x10d   : > { %874 = vmatmul.bf16.gmra.mxu3 %v4296_v58 }
 0x118   : > { %v693_v59 = vpop.f32.mrf.mxu0 }
 0x119   : > { %v742_v60 = vpop.f32.mrf.mxu1 }
 0x11a   : > { %v4302_v61 = vadd.f32 %v742_v60, %v693_v59  ;;  %v3102_v59 = vld [vmem:[%s4069_s27 + $0x60] sm:$0xf]  ;;  %v3286_v60 = vld [vmem:[%s4069_s27 + $0x64] sm:$0xf0] }
 0x11b   : > { %1080 = vmatmul.bf16.vlgmr.msrb.gmra.mxu0 %v4153_v45 }
 0x11c   : > { %1129 = vmatmul.bf16.vlgmr.msrb.gmra.mxu1 %v4158_v50  ;;  %1178 = vmatmul.bf16.vlgmr.msrb.gmra.mxu2 %v4153_v45 }
 0x11d   : > { %1227 = vmatmul.bf16.vlgmr.msrb.gmra.mxu3 %v4158_v50  ;;  %v3287_v50 = vld [vmem:[%s4069_s27 + $0x74] sm:$0xf] }
 0x11e   : > { %v3115_v12 = vor.u32 %v3287_v50, %v3112_v11 }
 0x11f   : > { %v791_v62 = vpop.f32.mrf.mxu2 }
 0x120   : > { %v840_v63 = vpop.f32.mrf.mxu3  ;;  %v695_v0 = vpop.f32.mrf.mxu0  ;;  %2278 = vmatpush.bf16.msra.mxu2 %v3115_v12  ;;  %v3283_v12 = vld [vmem:[%s4069_s27 + $0x54] sm:$0xf] }
 0x121   : > { %v4308_v1 = vadd.f32 %v840_v63, %v791_v62  ;;  %v744_v2 = vpop.f32.mrf.mxu1  ;;  %v3166_v62 = vld [vmem:[%s4069_s27 + $0xe0] sm:$0xf] }
 0x122   : > { %v4310_v3 = vadd.f32 %v744_v2, %v695_v0  ;;  %v3103_v0 = vor.u32 %v3286_v60, %v3102_v59  ;;  %v3302_v2 = vld [vmem:[%s4069_s27 + $0xe4] sm:$0xf0] }
 0x123   : > { %v3021_v59 = vmul.f32 -1.442695, %v4308_v1 }
 0x124   : > { %2279 = vmatpush.bf16.msra.mxu2 %v3107_v47  ;;  %v3281_v47 = vld [vmem:[%s4069_s27 + $0x44] sm:$0xf] }
 0x127   : > { %v793_v4 = vpop.f32.mrf.mxu2 }
 0x128   : > { %v842_v5 = vpop.f32.mrf.mxu3  ;;  %v698_v6 = vpop.f32.mrf.mxu0 }
 0x129   : > { %v4312_v9 = vadd.f32 %v842_v5, %v793_v4  ;;  %v747_v10 = vpop.f32.mrf.mxu1  ;;  %v3167_v4 = vor.u32 %v3302_v2, %v3166_v62  ;;  %v3022_v2 = vmul.f32 -1.442695, %v4310_v3 }
 0x12a   : > { %v4314_v45 = vadd.f32 %v747_v10, %v698_v6 }
 0x12b   : > { %1085 = vmatmul.bf16.gmra.mxu0 %v4182_v15 }
 0x12c   : > { %1134 = vmatmul.bf16.gmra.mxu1 %v4184_v16  ;;  %1183 = vmatmul.bf16.gmra.mxu2 %v4182_v15  ;;  %v3288_v15 = vld [vmem:[%s4069_s27 + $0x74] sm:$0xf0] }
 0x12d   : > { %1232 = vmatmul.bf16.gmra.mxu3 %v4184_v16  ;;  %v3111_v25 = vor.u32 %v3288_v15, %v3110_v24  ;;  %v3174_v16 = vld [vmem:[%s4069_s27 + $0xf0] sm:$0xf] }
 0x12e   : > { %v3175_v32 = vor.u32 %v3304_v26, %v3174_v16 }
 0x12f   : > { %v796_v17 = vpop.f32.mrf.mxu2  ;;  %2180 = vmatpush.bf16.msra.mxu0 %v3111_v25 }
 0x130   : > { %v845_v18 = vpop.f32.mrf.mxu3  ;;  %v700_v19 = vpop.f32.mrf.mxu0  ;;  %2229 = vmatpush.bf16.msra.mxu1 %v3175_v32 }
 0x131   : > { %v4324_v21 = vadd.f32 %v845_v18, %v796_v17  ;;  %v749_v22 = vpop.f32.mrf.mxu1 }
 0x132   : > { %v4326_v23 = vadd.f32 %v749_v22, %v700_v19  ;;  %v3299_v19 = vld [vmem:[%s4069_s27 + $0xd4] sm:$0xf]  ;;  %v3099_v22 = vor.u32 %v3283_v12, %v3096_v14 }
 0x133   : > { %2181 = vmatpush.bf16.msra.mxu0 %v3103_v0  ;;  %v3282_v0 = vld [vmem:[%s4069_s27 + $0x44] sm:$0xf0] }
 0x134   : > { %2230 = vmatpush.bf16.msra.mxu1 %v3167_v4  ;;  %2280 = vmatpush.bf16.msra.mxu2 %v3099_v22  ;;  %v3150_v4 = vld [vmem:[%s4069_s27 + $0xc0] sm:$0xf] }
 0x137   : > { %v798_v29 = vpop.f32.mrf.mxu2 }
 0x138   : > { %v847_v30 = vpop.f32.mrf.mxu3  ;;  %v703_v31 = vpop.f32.mrf.mxu0 }
 0x139   : > { %v752_v35 = vpop.f32.mrf.mxu1  ;;  %v4332_v36 = vadd.f32 %v847_v30, %v798_v29  ;;  %v3094_v29 = vld [vmem:[%s4069_s27 + $0x50] sm:$0xf]  ;;  %v3284_v30 = vld [vmem:[%s4069_s27 + $0x54] sm:$0xf0] }
 0x13a   : > { %v4335_v37 = vadd.f32 %v752_v35, %v703_v31 }
 0x13b   : > { %1090 = vmatmul.bf16.gmra.mxu0 %v4202_v33 }
 0x13c   : > { %1139 = vmatmul.bf16.gmra.mxu1 %v4204_v34  ;;  %1188 = vmatmul.bf16.gmra.mxu2 %v4202_v33 }
 0x13d   : > { %1237 = vmatmul.bf16.gmra.mxu3 %v4204_v34 }
 0x13f   : > { %v801_v38 = vpop.f32.mrf.mxu2 }
 0x140   : > { %v850_v39 = vpop.f32.mrf.mxu3  ;;  %v705_v40 = vpop.f32.mrf.mxu0 }
 0x141   : > { %v754_v43 = vpop.f32.mrf.mxu1  ;;  %v4344_v52 = vadd.f32 %v850_v39, %v801_v38  ;;  %v3095_v38 = vor.u32 %v3284_v30, %v3094_v29  ;;  %v3158_v39 = vld [vmem:[%s4069_s27 + $0xd0] sm:$0xf]  ;;  %v3144_v30 = vld [vmem:[%s4069_s27 + $0xb8] sm:$0xf0] }
 0x142   : > { %v4346_v34 = vadd.f32 %v754_v43, %v705_v40  ;;  %v3300_v40 = vld [vmem:[%s4069_s27 + $0xd4] sm:$0xf0] }
 0x143   : > { %5731 = vst [vmem:[#allocation26_spill] sm:$0xff] %v4344_v52  ;;  %2182 = vmatpush.bf16.msra.mxu0 %v3095_v38  ;;  %v3159_v41 = vor.u32 %v3300_v40, %v3158_v39  ;;  %v3024_v40 = vmul.f32 -1.442695, %v4314_v45 }
 0x145   : > { %2231 = vmatpush.bf16.msra.mxu1 %v3159_v41 }
 0x147   : > { %v803_v33 = vpop.f32.mrf.mxu2 }
 0x148   : > { %v852_v55 = vpop.f32.mrf.mxu3  ;;  %v708_v56 = vpop.f32.mrf.mxu0 }
 0x149   : > { %v757_v63 = vpop.f32.mrf.mxu1  ;;  %v4353_v5 = vadd.f32 %v852_v55, %v803_v33  ;;  %v3297_v33 = vld [vmem:[%s4069_s27 + $0xc4] sm:$0xf]  ;;  %v3152_v55 = vld [vmem:[%s4069_s27 + $0xc8] sm:$0xf0] }
 0x14a   : > { %v4355_v6 = vadd.f32 %v757_v63, %v708_v56  ;;  %v3091_v56 = vor.u32 %v3281_v47, %v3088_v51  ;;  %v3155_v60 = vor.u32 %v3297_v33, %v3152_v55  ;;  %v3086_v63 = vld [vmem:[%s4069_s27 + $0x40] sm:$0xf]  ;;  %v3026_v51 = vmul.f32 -1.442695, %v4326_v23 }
 0x14b   : > { %1095 = vmatmul.bf16.gmra.mxu0 %v4222_v53  ;;  %5732 = vst [vmem:[#allocation27_spill] sm:$0xff] %v4353_v5  ;;  %v3087_v12 = vor.u32 %v3282_v0, %v3086_v63 }
 0x14c   : > { %5733 = vst [vmem:[#allocation28_spill] sm:$0xff] %v4355_v6  ;;  %1144 = vmatmul.bf16.gmra.mxu1 %v4224_v54  ;;  %1193 = vmatmul.bf16.gmra.mxu2 %v4222_v53  ;;  %v3163_v53 = vor.u32 %v3299_v19, %v3160_v20 }
 0x14d   : > { %1242 = vmatmul.bf16.gmra.mxu3 %v4224_v54  ;;  %2281 = vmatpush.bf16.msra.mxu2 %v3091_v56 }
 0x14e   : > { %2329 = vmatpush.bf16.msra.mxu3 %v3163_v53  ;;  %2183 = vmatpush.bf16.msra.mxu0 %v3087_v12  ;;  %v3279_v53 = vld [vmem:[%s4069_s27 + $0x34] sm:$0xf] }
 0x14f   : > { %v806_v10 = vpop.f32.mrf.mxu2 }
 0x150   : > { %v855_v50 = vpop.f32.mrf.mxu3  ;;  %v710_v11 = vpop.f32.mrf.mxu0 }
 0x151   : > { %v759_v13 = vpop.f32.mrf.mxu1  ;;  %v4362_v17 = vadd.f32 %v855_v50, %v806_v10  ;;  %v3298_v10 = vld [vmem:[%s4069_s27 + $0xc4] sm:$0xf0] }
 0x152   : > { %v4364_v18 = vadd.f32 %v759_v13, %v710_v11  ;;  %2330 = vmatpush.bf16.msra.mxu3 %v3155_v60  ;;  %v3151_v14 = vor.u32 %v3298_v10, %v3150_v4 }
 0x153   : > { %5734 = vst [vmem:[#allocation29_spill] sm:$0xff] %v4362_v17 }
 0x154   : > { %5735 = vst [vmem:[#allocation30_spill] sm:$0xff] %v4364_v18  ;;  %2232 = vmatpush.bf16.msra.mxu1 %v3151_v14 }
 0x157   : > { %v808_v24 = vpop.f32.mrf.mxu2 }
 0x158   : > { %v857_v54 = vpop.f32.mrf.mxu3  ;;  %v713_v15 = vpop.f32.mrf.mxu0 }
 0x159   : > { %v762_v25 = vpop.f32.mrf.mxu1  ;;  %v4368_v16 = vadd.f32 %v857_v54, %v808_v24  ;;  %v3080_v24 = vld [vmem:[%s4069_s27 + $0x38] sm:$0xf0]  ;;  %v3295_v54 = vld [vmem:[%s4069_s27 + $0xb4] sm:$0xf] }
 0x15a   : > { %v4387_v46 = vadd.f32 %v762_v25, %v713_v15  ;;  %v3083_v29 = vor.u32 %v3279_v53, %v3080_v24  ;;  %v3078_v24 = vld [vmem:[%s4069_s27 + $0x30] sm:$0xf] }
 0x15b   : > { %5736 = vst [vmem:[#allocation31_spill] sm:$0xff] %v4368_v16  ;;  %1100 = vmatmul.bf16.gmra.mxu0 %v4242_v7 }
 0x15c   : > { %1149 = vmatmul.bf16.gmra.mxu1 %v4244_v8  ;;  %1198 = vmatmul.bf16.gmra.mxu2 %v4242_v7  ;;  %v3020_v7 = vmul.f32 -1.442695, %v4302_v61 }
 0x15d   : > { %1247 = vmatmul.bf16.gmra.mxu3 %v4244_v8  ;;  %2282 = vmatpush.bf16.msra.mxu2 %v3083_v29  ;;  %v3142_v29 = vld [vmem:[%s4069_s27 + $0xb0] sm:$0xf] }
 0x15e   : > { %3430 = vpow2.f32 %v3020_v7  ;;  %v3025_v7 = vmul.f32 -1.442695, %v4324_v21 }
 0x15f   : > { %v811_v26 = vpop.f32.mrf.mxu2  ;;  %3432 = vpow2.f32 %v3021_v59 }
 0x160   : > { %v860_v31 = vpop.f32.mrf.mxu3  ;;  %v4376_v32 = vpop.f32.mrf.mxu0  ;;  %3434 = vpow2.f32 %v3022_v2  ;;  %v3027_v2 = vmul.f32 -1.442695, %v4332_v36 }
 0x161   : > { %v4378_v35 = vpop.f32.mrf.mxu1  ;;  %v4398_v62 = vadd.f32 %v860_v31, %v811_v26  ;;  %v3023_v26 = vmul.f32 -1.442695, %v4312_v9 }
 0x163   : > { %5739 = vst [vmem:[#allocation34_spill] sm:$0xff] %v4398_v62  ;;  %v3294_v62 = vld [vmem:[%s4069_s27 + $0xa4] sm:$0xf0] }
 0x167   : > { %v4383_v8 = vpop.f32.mrf.mxu2 }
 0x168   : > { %5737 = vst [vmem:[#allocation32_spill] sm:$0xff] %v4383_v8  ;;  %v4385_v42 = vpop.f32.mrf.mxu3  ;;  %v718_v43 = vpop.f32.mrf.mxu0  ;;  %v3134_v8 = vld [vmem:[%s4069_s27 + $0xa0] sm:$0xf] }
 0x169   : > { %5738 = vst [vmem:[#allocation33_spill] sm:$0xff] %v4385_v42  ;;  %v767_v44 = vpop.f32.mrf.mxu1  ;;  %v3031_v42 = vmul.f32 -1.442695, %v4353_v5 }
 0x16a   : > { %v4409_v19 = vadd.f32 %v767_v44, %v718_v43  ;;  %v3147_v43 = vor.u32 %v3295_v54, %v3144_v30  ;;  %v3296_v30 = vld [vmem:[%s4069_s27 + $0xb4] sm:$0xf0] }
 0x16b   : > { %1105 = vmatmul.bf16.gmra.mxu0 %v4262_v27 }
 0x16c   : > { %1154 = vmatmul.bf16.gmra.mxu1 %v4264_v28  ;;  %1203 = vmatmul.bf16.gmra.mxu2 %v4262_v27  ;;  %5742 = vst [vmem:[#allocation37_spill] sm:$0xff] %v4409_v19  ;;  %v3070_v19 = vld [vmem:[%s4069_s27 + $0x20] sm:$0xf] }
 0x16d   : > { %1252 = vmatmul.bf16.gmra.mxu3 %v4264_v28  ;;  %v3431_v28 = vpop.eup %3430 }
 0x16e   : > { %v4411_v20 = vadd.f32 1.0, %v3431_v28  ;;  %v3433_v25 = vpop.eup %3432  ;;  %2331 = vmatpush.bf16.msra.mxu3 %v3147_v43 }
 0x16f   : > { %v816_v50 = vpop.f32.mrf.mxu2  ;;  %v3435_v39 = vpop.eup %3434  ;;  %v4431_v44 = vadd.f32 1.0, %v3433_v25 }
 0x170   : > { %v865_v27 = vpop.f32.mrf.mxu3  ;;  %v4405_v11 = vpop.f32.mrf.mxu0  ;;  %3436 = vrcp.f32 %v4411_v20  ;;  %v4434_v47 = vadd.f32 1.0, %v3435_v39  ;;  %v1405_v12 = vand.u32 2147483647, %v4411_v20  ;;  %vm1401_vm0 = vweird.f32 %v4411_v20 }
 0x171   : > { %5740 = vst [vmem:[#allocation35_spill] sm:$0xff] %v4405_v11  ;;  %v4407_v13 = vpop.f32.mrf.mxu1  ;;  %v4413_v22 = vadd.f32 %v865_v27, %v816_v50  ;;  %3438 = vpow2.f32 %v3023_v26  ;;  %v3280_v26 = vld [vmem:[%s4069_s27 + $0x34] sm:$0xf0]  ;;  %vm1416_vm4 = vweird.f32 %v4431_v44 }
 0x172   : > { %5741 = vst [vmem:[#allocation36_spill] sm:$0xff] %v4407_v13  ;;  %3440 = vpow2.f32 %v3024_v40  ;;  %vm4492_vm2 = vcmp.eq.f32.partialorder %v1405_v12, 8.507059e+37  ;;  %v1420_v12 = vand.u32 2147483647, %v4431_v44  ;;  %vm1431_vm5 = vweird.f32 %v4434_v47 }
 0x173   : > { %5743 = vst [vmem:[#allocation38_spill] sm:$0xff] %v4413_v22  ;;  %3442 = vpow2.f32 %v3025_v7 }
 0x174   : > { %3444 = vrcp.f32 %v4431_v44  ;;  %vm4553_vm8 = vcmp.eq.f32.partialorder %v1420_v12, 8.507059e+37 }
 0x175   : > { %3446 = vrcp.f32 %v4434_v47 }
 0x176   : > { %v4440_v33 = vpop.eup %3436  ;;  %3448 = vpow2.f32 %v3026_v51  ;;  %v3028_v51 = vmul.f32 -1.442695, %v4335_v37 }
 0x177   : > { %v4418_v15 = vpop.f32.mrf.mxu2  ;;  %v1397_v60 = vmul.f32 %v4440_v33, %v4411_v20  ;;  %3450 = vpow2.f32 %v3027_v2  ;;  %v3143_v2 = vor.u32 %v3296_v30, %v3142_v29  ;;  %vm1402_vm1 = vweird.f32 %v4440_v33 }
 0x178   : > { %5744 = vst [vmem:[#allocation39_spill] sm:$0xff] %v4418_v15  ;;  %v4423_v31 = vpop.f32.mrf.mxu3  ;;  %v4425_v38 = vpop.f32.mrf.mxu0  ;;  %vm4512_vm3 = vmor %vm1401_vm0, %vm1402_vm1 }
 0x179   : > { %5745 = vst [vmem:[#allocation40_spill] sm:$0xff] %v4423_v31  ;;  %v4428_v41 = vpop.f32.mrf.mxu1  ;;  %v1398_v10 = vsub.f32 1.0, %v1397_v60  ;;  %2233 = vmatpush.bf16.msra.mxu1 %v3143_v2 }
 0x17b   : > { %1110 = vmatmul.bf16.gmra.mxu0 %v4282_v48  ;;  %v1399_v7 = vmul.f32 %v4440_v33, %v1398_v10 }
 0x17c   : > { %1159 = vmatmul.bf16.gmra.mxu1 %v4284_v49  ;;  %1208 = vmatmul.bf16.gmra.mxu2 %v4282_v48 }
 0x17d   : > { %1257 = vmatmul.bf16.gmra.mxu3 %v4284_v49  ;;  %v3439_v49 = vpop.eup %3438 }
 0x17e   : > { %v3441_v63 = vpop.eup %3440  ;;  %v4457_v50 = vadd.f32 1.0, %v3439_v49 }
 0x17f   : > { %v4443_v55 = vpop.f32.mrf.mxu2  ;;  %v3443_v0 = vpop.eup %3442  ;;  %v4462_v14 = vadd.f32 1.0, %v3441_v63  ;;  %v1407_v63 = vand.u32 2147483648, %v4411_v20  ;;  %v3072_v20 = vld [vmem:[%s4069_s27 + $0x28] sm:$0xf0] }
 0x180   : > { %v4446_v56 = vpop.f32.mrf.mxu3  ;;  %v4448_v59 = vpop.f32.mrf.mxu0  ;;  %v4464_v53 = vadd.f32 1.0, %v3443_v0  ;;  %3452 = vrcp.f32 %v4457_v50  ;;  %v3079_v0 = vor.u32 %v3280_v26, %v3078_v24  ;;  %v1435_v26 = vand.u32 2147483647, %v4434_v47 }
 0x181   : > { %5746 = vst [vmem:[#allocation41_spill] sm:$0xff] %v4448_v59  ;;  %v4452_v48 = vpop.f32.mrf.mxu1  ;;  %v4455_v4 = vpop.eup %3444  ;;  %3454 = vrcp.f32 %v4462_v14  ;;  %v3293_v59 = vld [vmem:[%s4069_s27 + $0xa4] sm:$0xf]  ;;  %vm1446_vm12 = vweird.f32 %v4457_v50  ;;  %vm1461_vm13 = vweird.f32 %v4462_v14 }
 0x182   : > { %5747 = vst [vmem:[#allocation42_spill] sm:$0xff] %v4452_v48  ;;  %v4459_v27 = vpop.eup %3446  ;;  %v1412_v25 = vmul.f32 %v4455_v4, %v4431_v44  ;;  %3456 = vrcp.f32 %v4464_v53  ;;  %2184 = vmatpush.bf16.msra.mxu0 %v3079_v0  ;;  %v3277_v0 = vld [vmem:[%s4069_s27 + $0x24] sm:$0xf]  ;;  %vm1417_vm6 = vweird.f32 %v4455_v4  ;;  %vm4557_vm9 = vcmp.eq.f32.partialorder %v1435_v26, 8.507059e+37 }
 0x183   : > { %v3449_v28 = vpop.eup %3448  ;;  %v1427_v43 = vmul.f32 %v4459_v27, %v4434_v47  ;;  %3458 = vpow2.f32 %v3028_v51  ;;  %v3029_v51 = vmul.f32 -1.442695, %v4344_v52  ;;  %vm1432_vm7 = vweird.f32 %v4459_v27  ;;  %vm4591_vm10 = vmor %vm1416_vm4, %vm1417_vm6 }
 0x184   : > { %v4486_v49 = vadd.f32 1.0, %v3449_v28  ;;  %v1400_v28 = vadd.f32 %v4440_v33, %v1399_v7  ;;  %v3451_v24 = vpop.eup %3450  ;;  %v1408_v7 = vor.u32 1.1754944e-38, %v1407_v63  ;;  %v3136_v63 = vld [vmem:[%s4069_s27 + $0xa8] sm:$0xf0]  ;;  %vm4604_vm11 = vmor %vm1431_vm5, %vm1432_vm7 }
 0x185   : > { %v1428_v48 = vsub.f32 1.0, %v1427_v43  ;;  %v1437_v43 = vand.u32 2147483648, %v4434_v47 }
 0x186   : > { %3460 = vrcp.f32 %v4486_v49  ;;  %v4506_v29 = vpop.eup %3452 }
 0x187   : > { %v4467_v54 = vpop.f32.mrf.mxu2  ;;  %v4535_v15 = vpop.eup %3454  ;;  %v1429_v11 = vmul.f32 %v4459_v27, %v1428_v48  ;;  %v1442_v30 = vmul.f32 %v4506_v29, %v4457_v50  ;;  %v1438_v10 = vor.u32 1.1754944e-38, %v1437_v43  ;;  %vm1447_vm14 = vweird.f32 %v4506_v29 }
 0x188   : > { %5748 = vst [vmem:[#allocation43_spill] sm:$0xff] %v4467_v54  ;;  %v4474_v39 = vpop.f32.mrf.mxu3  ;;  %v4476_v40 = vpop.f32.mrf.mxu0  ;;  %v1422_v54 = vand.u32 2147483648, %v4431_v44  ;;  %vm1462_vm0 = vweird.f32 %v4535_v15 }
 0x189   : > { %5749 = vst [vmem:[#allocation44_spill] sm:$0xff] %v4474_v39  ;;  %v4483_v60 = vpop.f32.mrf.mxu1  ;;  %v1413_v39 = vsub.f32 1.0, %v1412_v25  ;;  %v3030_v25 = vmul.f32 -1.442695, %v4346_v34  ;;  %vm4714_vm6 = vmor %vm1461_vm13, %vm1462_vm0 }
 0x18a   : > { %v4540_v13 = vor.u32 1.1754944e-38, %v1422_v54 }
 0x18b   : > { %1115 = vmatmul.bf16.gmra.mxu0 %v4294_v57  ;;  %3462 = vpow2.f32 %v3030_v25  ;;  %v3278_v25 = vld [vmem:[%s4069_s27 + $0x24] sm:$0xf0] }
 0x18c   : > { %1164 = vmatmul.bf16.gmra.mxu1 %v4296_v58  ;;  %1213 = vmatmul.bf16.gmra.mxu2 %v4294_v57  ;;  %v1414_v57 = vmul.f32 %v4455_v4, %v1413_v39  ;;  %v1404_v39 = vsel %vm4512_vm3, %v4440_v33, %v1400_v28  ;;  %v1452_v28 = vand.u32 2147483648, %v4457_v50  ;;  %3464 = vpow2.f32 %v3029_v51  ;;  %vm4690_vm3 = vmor %vm1446_vm12, %vm1447_vm14 }
 0x18d   : > { %1262 = vmatmul.bf16.gmra.mxu3 %v4296_v58  ;;  %v4526_v58 = vadd.f32 %v4428_v41, %v4425_v38  ;;  %v4543_v38 = vadd.f32 1.0, %v3451_v24  ;;  %v3075_v24 = vor.u32 %v3277_v0, %v3072_v20  ;;  %v1409_v12 = vsel %vm4492_vm2, %v1408_v7, %v1404_v39 }
 0x18e   : > { %v1415_v26 = vadd.f32 %v4455_v4, %v1414_v57  ;;  %v1443_v7 = vsub.f32 1.0, %v1442_v30  ;;  %v3071_v51 = vor.u32 %v3278_v25, %v3070_v19  ;;  %v4585_v57 = vmul.f32 %v1409_v12, %v4302_v61 }
 0x18f   : > { %v4519_v2 = vpop.f32.mrf.mxu2  ;;  %5754 = vst [vmem:[#allocation45_spill] sm:$0xff] %v4526_v58  ;;  %v4547_v58 = vpop.eup %3456  ;;  %3466 = vrcp.f32 %v4543_v38  ;;  %2283 = vmatpush.bf16.msra.mxu2 %v3075_v24  ;;  %v1450_v20 = vand.u32 2147483647, %v4457_v50  ;;  %v4609_v44 = vor.u32 1.1754944e-38, %v1452_v28  ;;  %vm1476_vm2 = vweird.f32 %v4464_v53 }
 0x190   : > { %v4531_v22 = vpop.f32.mrf.mxu3  ;;  %v4533_v31 = vpop.f32.mrf.mxu0  ;;  %3468 = vpow2.f32 %v3031_v42  ;;  %2185 = vmatpush.bf16.msra.mxu0 %v3071_v51  ;;  %v1419_v47 = vsel %vm4591_vm10, %v4455_v4, %v1415_v26  ;;  %v1444_v51 = vmul.f32 %v4506_v29, %v1443_v7  ;;  %v4632_v4 = vadd.f32 %v4483_v60, %v4476_v40 }
 0x191   : > { %5755 = vst [vmem:[#allocation46_spill] sm:$0xff] %v4533_v31  ;;  %v4545_v41 = vpop.f32.mrf.mxu1  ;;  %v3459_v33 = vpop.eup %3458  ;;  %v4564_v31 = vadd.f32 %v4446_v56, %v4443_v55  ;;  %v1457_v55 = vmul.f32 %v4535_v15, %v4462_v14  ;;  %v1472_v56 = vmul.f32 %v4547_v58, %v4464_v53  ;;  %v1424_v7 = vsel %vm4553_vm8, %v4540_v13, %v1419_v47 }
 0x192   : > { %5756 = vst [vmem:[#allocation47_spill] sm:$0xff] %v4545_v41  ;;  %v3139_v41 = vor.u32 %v3293_v59, %v3136_v63  ;;  %v4568_v52 = vpop.eup %3460  ;;  %v1430_v59 = vadd.f32 %v4459_v27, %v1429_v11  ;;  %v4582_v0 = vadd.f32 1.0, %v3459_v33  ;;  %v3135_v63 = vor.u32 %v3294_v62, %v3134_v8  ;;  %v3275_v8 = vld [vmem:[%s4069_s27 + $0x14] sm:$0xf]  ;;  %v3064_v62 = vld [vmem:[%s4069_s27 + $0x18] sm:$0xf0] }
 0x193   : > { %5761 = vst [vmem:[#allocation48_spill] sm:$0xff] %v4564_v31  ;;  %v1487_v43 = vmul.f32 %v4568_v52, %v4486_v49  ;;  %v3463_v19 = vpop.eup %3462  ;;  %v1458_v24 = vsub.f32 1.0, %v1457_v55  ;;  %v1473_v25 = vsub.f32 1.0, %v1472_v56  ;;  %v3291_v55 = vld [vmem:[%s4069_s27 + $0x94] sm:$0xf]  ;;  %vm4650_vm15 = vcmp.eq.f32.partialorder %v1450_v20, 8.507059e+37 }
 0x194   : > { %2332 = vmatpush.bf16.msra.mxu3 %v3139_v41  ;;  %v1467_v41 = vand.u32 2147483648, %v4462_v14  ;;  %v1434_v28 = vsel %vm4604_vm11, %v4459_v27, %v1430_v59  ;;  %2234 = vmatpush.bf16.msra.mxu1 %v3135_v63  ;;  %v3465_v12 = vpop.eup %3464  ;;  %3470 = vrcp.f32 %v4582_v0  ;;  %5768 = vst [vmem:[#allocation51_spill] sm:$0xff] %v4632_v4  ;;  %v4636_v27 = vadd.f32 1.0, %v3463_v19  ;;  %v3128_v56 = vld [vmem:[%s4069_s27 + $0x98] sm:$0xf0] }
 0x195   : > { %v4634_v26 = vpop.eup %3466  ;;  %v1488_v11 = vsub.f32 1.0, %v1487_v43  ;;  %v3067_v59 = vor.u32 %v3275_v8, %v3064_v62  ;;  %v4642_v63 = vadd.f32 %v4531_v22, %v4519_v2  ;;  %v1439_v40 = vsel %vm4557_vm9, %v1438_v10, %v1434_v28 }
 0x196   : > { %v1465_v43 = vand.u32 2147483647, %v4462_v14  ;;  %v1459_v19 = vmul.f32 %v4535_v15, %v1458_v24  ;;  %v1474_v22 = vmul.f32 %v4547_v58, %v1473_v25  ;;  %v1480_v2 = vand.u32 2147483647, %v4464_v53  ;;  %v3469_v13 = vpop.eup %3468 }
 0x197   : > { %v4598_v39 = vpop.f32.mrf.mxu2  ;;  %5769 = vst [vmem:[#allocation52_spill] sm:$0xff] %v4642_v63  ;;  %2284 = vmatpush.bf16.msra.mxu2 %v3067_v59  ;;  %v3131_v48 = vor.u32 %v3291_v55, %v3128_v56  ;;  %v1445_v54 = vadd.f32 %v4506_v29, %v1444_v51  ;;  %v1502_v10 = vmul.f32 %v4634_v26, %v4543_v38  ;;  %v4661_v20 = vadd.f32 1.0, %v3465_v12  ;;  %v3292_v63 = vld [vmem:[%s4069_s27 + $0x94] sm:$0xf0] }
 0x198   : > { %5764 = vst [vmem:[#allocation49_spill] sm:$0xff] %v4598_v39  ;;  %v4615_v30 = vpop.f32.mrf.mxu3  ;;  %v4617_v33 = vpop.f32.mrf.mxu0  ;;  %v4664_v61 = vmul.f32 %v1424_v7, %v4308_v1  ;;  %v1468_v8 = vor.u32 1.1754944e-38, %v1467_v41  ;;  %v1489_v62 = vmul.f32 %v4568_v52, %v1488_v11  ;;  %v4673_v24 = vmul.f32 %v1439_v40, %v4310_v3 }
 0x199   : > { %5767 = vst [vmem:[#allocation50_spill] sm:$0xff] %v4615_v30  ;;  %v4625_v42 = vpop.f32.mrf.mxu1  ;;  %v3032_v30 = vmul.f32 -1.442695, %v4355_v6  ;;  %2333 = vmatpush.bf16.msra.mxu3 %v3131_v48  ;;  %vm4676_vm1 = vcmp.eq.f32.partialorder %v1465_v43, 8.507059e+37  ;;  %v1482_v1 = vand.u32 2147483648, %v4464_v53  ;;  %v1460_v12 = vadd.f32 %v4535_v15, %v1459_v19 }
 0x19a   : > { %v4670_v28 = vpop.eup %3470  ;;  %v1475_v51 = vadd.f32 %v4547_v58, %v1474_v22  ;;  %vm1477_vm4 = vweird.f32 %v4547_v58  ;;  %vm4697_vm5 = vcmp.eq.f32.partialorder %v1480_v2, 8.507059e+37  ;;  %v4701_v59 = vadd.f32 1.0, %v3469_v13  ;;  %v3290_v6 = vld [vmem:[%s4069_s27 + $0x84] sm:$0xf0] }
 0x19b   : > { %3472 = vpow2.f32 %v3032_v30  ;;  %v1449_v50 = vsel %vm4690_vm3, %v4506_v29, %v1445_v54  ;;  %v1503_v56 = vsub.f32 1.0, %v1502_v10  ;;  %v3034_v7 = vmul.f32 -1.442695, %v4364_v18  ;;  %vm4725_vm8 = vmor %vm1476_vm2, %vm1477_vm4  ;;  %v3118_v18 = vld [vmem:[%s4069_s27 + $0x80] sm:$0xf] }
 0x19c   : > { %3474 = vrcp.f32 %v4636_v27  ;;  %v1490_v43 = vadd.f32 %v4568_v52, %v1489_v62  ;;  %vm1492_vm7 = vweird.f32 %v4568_v52  ;;  %v1517_v29 = vmul.f32 %v4670_v28, %v4582_v0 }
 0x19d   : > { %3476 = vrcp.f32 %v4661_v20  ;;  %v3033_v19 = vmul.f32 -1.442695, %v4362_v17  ;;  %v1483_v14 = vor.u32 1.1754944e-38, %v1482_v1  ;;  %vm1491_vm9 = vweird.f32 %v4486_v49  ;;  %v3062_v1 = vld [vmem:[%s4069_s27 + $0x10] sm:$0xf] }
 0x19e   : > { %v1495_v48 = vand.u32 2147483647, %v4486_v49  ;;  %v1497_v13 = vand.u32 2147483648, %v4486_v49  ;;  %v1454_v10 = vsel %vm4650_vm15, %v4609_v44, %v1449_v50  ;;  %v1464_v53 = vsel %vm4714_vm6, %v4535_v15, %v1460_v12  ;;  %vm4744_vm10 = vmor %vm1491_vm9, %vm1492_vm7  ;;  %v3274_v17 = vld [vmem:[%s4069_s27 + $0x4] sm:$0xf0] }
 0x19f   : > { %v4668_v47 = vpop.f32.mrf.mxu2  ;;  %v1479_v62 = vsel %vm4725_vm8, %v4547_v58, %v1475_v51  ;;  %3478 = vrcp.f32 %v4701_v59  ;;  %v1504_v49 = vmul.f32 %v4634_v26, %v1503_v56  ;;  %v1510_v3 = vand.u32 2147483647, %v4543_v38 }
 0x1a0   : > { %v4682_v41 = vpop.f32.mrf.mxu3  ;;  %v4684_v25 = vpop.f32.mrf.mxu0  ;;  %v1512_v44 = vand.u32 2147483648, %v4543_v38  ;;  %3480 = vpow2.f32 %v3034_v7  ;;  %v1494_v15 = vsel %vm4744_vm10, %v4568_v52, %v1490_v43  ;;  %v1518_v60 = vsub.f32 1.0, %v1517_v29 }
 0x1a1   : > { %v4703_v55 = vpop.f32.mrf.mxu1  ;;  %v3473_v22 = vpop.eup %3472  ;;  %3482 = vpow2.f32 %v3033_v19  ;;  %vm1496_vm11 = vcmp.eq.f32.partialorder %v1495_v48, 8.507059e+37  ;;  %v1498_v50 = vor.u32 1.1754944e-38, %v1497_v13  ;;  %v3035_v40 = vmul.f32 -1.442695, %v4368_v16 }
 0x1a2   : > { %v4732_v54 = vpop.eup %3474  ;;  %v4754_v12 = vadd.f32 1.0, %v3473_v22  ;;  %v4768_v52 = vmul.f32 %v1454_v10, %v4312_v9  ;;  %v1469_v43 = vsel %vm4676_vm1, %v1468_v8, %v1464_v53  ;;  %vm1506_vm12 = vweird.f32 %v4543_v38 }
 0x1a3   : > { %v4758_v51 = vpop.eup %3476  ;;  %v1547_v56 = vmul.f32 %v4732_v54, %v4636_v27  ;;  %vm1507_vm13 = vweird.f32 %v4634_v26  ;;  %v1484_v19 = vsel %vm4697_vm5, %v1483_v14, %v1479_v62  ;;  %v1499_v22 = vsel %vm1496_vm11, %v1498_v50, %v1494_v15  ;;  %v3126_v50 = vld [vmem:[%s4069_s27 + $0x90] sm:$0xf] }
 0x1a4   : > { %v1505_v48 = vadd.f32 %v4634_v26, %v1504_v49  ;;  %vm4779_vm14 = vcmp.eq.f32.partialorder %v1510_v3, 8.507059e+37  ;;  %v1513_v8 = vor.u32 1.1754944e-38, %v1512_v44  ;;  %v1519_v38 = vmul.f32 %v4670_v28, %v1518_v60  ;;  %vm4789_vm15 = vmor %vm1506_vm12, %vm1507_vm13  ;;  %v3276_v60 = vld [vmem:[%s4069_s27 + $0x14] sm:$0xf0] }
 0x1a5   : > { %v4783_v9 = vpop.eup %3478  ;;  %v1532_v30 = vmul.f32 %v4758_v51, %v4661_v20  ;;  %3484 = vrcp.f32 %v4754_v12  ;;  %v1525_v10 = vand.u32 2147483647, %v4582_v0  ;;  %v1527_v53 = vand.u32 2147483648, %v4582_v0 }
 0x1a6   : > { %v3481_v11 = vpop.eup %3480  ;;  %v1548_v62 = vsub.f32 1.0, %v1547_v56  ;;  %3486 = vpow2.f32 %v3035_v40  ;;  %v4797_v3 = vmul.f32 %v1469_v43, %v4314_v45  ;;  %v4800_v44 = vmul.f32 %v1484_v19, %v4324_v21 }
 0x1a7   : > { %v4756_v58 = vpop.f32.mrf.mxu2  ;;  %v3483_v49 = vpop.eup %3482  ;;  %v4803_v15 = vmul.f32 %v1499_v22, %v4326_v23  ;;  %vm1521_vm0 = vweird.f32 %v4582_v0  ;;  %v1509_v56 = vsel %vm4789_vm15, %v4634_v26, %v1505_v48  ;;  %vm1522_vm1 = vweird.f32 %v4670_v28 }
 0x1a8   : > { %v4763_v7 = vpop.f32.mrf.mxu3  ;;  %v4765_v2 = vpop.f32.mrf.mxu0  ;;  %v1542_v45 = vand.u32 2147483648, %v4661_v20  ;;  %v1555_v40 = vand.u32 2147483647, %v4636_v27  ;;  %v1520_v21 = vadd.f32 %v4670_v28, %v1519_v38  ;;  %v1533_v43 = vsub.f32 1.0, %v1532_v30  ;;  %vm4845_vm4 = vmor %vm1521_vm0, %vm1522_vm1 }
 0x1a9   : > { %v4774_v29 = vpop.f32.mrf.mxu1  ;;  %v1562_v23 = vmul.f32 %v4783_v9, %v4701_v59  ;;  %v4818_v19 = vadd.f32 1.0, %v3481_v11  ;;  %v1549_v4 = vmul.f32 %v4732_v54, %v1548_v62  ;;  %v4823_v14 = vadd.f32 1.0, %v3483_v49 }
 0x1aa   : > { %v3063_v26 = vor.u32 %v3276_v60, %v3062_v1  ;;  %v3127_v48 = vor.u32 %v3292_v63, %v3126_v50  ;;  %vm4831_vm2 = vcmp.eq.f32.partialorder %v1525_v10, 8.507059e+37  ;;  %v1528_v30 = vor.u32 1.1754944e-38, %v1527_v53  ;;  %v3273_v50 = vld [vmem:[%s4069_s27 + $0x4] sm:$0xf]  ;;  %v3054_v53 = vld [vmem:[%s4069_s27] sm:$0xf] }
 0x1ab   : > { %v4829_v16 = vpop.eup %3484  ;;  %vm1536_vm3 = vweird.f32 %v4661_v20  ;;  %v1557_v11 = vand.u32 2147483648, %v4636_v27  ;;  %v1514_v1 = vsel %vm4779_vm14, %v1513_v8, %v1509_v56  ;;  %v4850_v49 = vor.u32 1.1754944e-38, %v1542_v45  ;;  %v3056_v56 = vld [vmem:[%s4069_s27 + $0x8] sm:$0xf0] }
 0x1ac   : > { %v3487_v63 = vpop.eup %3486  ;;  %vm4852_vm5 = vcmp.eq.f32.partialorder %v1555_v40, 8.507059e+37  ;;  %2186 = vmatpush.bf16.msra.mxu0 %v3063_v26  ;;  %2235 = vmatpush.bf16.msra.mxu1 %v3127_v48  ;;  %v1524_v0 = vsel %vm4845_vm4, %v4670_v28, %v1520_v21  ;;  %v1534_v13 = vmul.f32 %v4758_v51, %v1533_v43  ;;  %v1572_v8 = vand.u32 2147483648, %v4701_v59  ;;  %v3289_v28 = vld [vmem:[%s4069_s27 + $0x84] sm:$0xf]  ;;  %v3120_v21 = vld [vmem:[%s4069_s27 + $0x88] sm:$0xf0] }
 0x1ad   : > { %5792 = vst [vmem:[#allocation53_spill] sm:$0xff] %v4850_v49  ;;  %3488 = vrcp.f32 %v4818_v19  ;;  %v1550_v45 = vadd.f32 %v4732_v54, %v1549_v4  ;;  %vm1552_vm6 = vweird.f32 %v4732_v54  ;;  %v1563_v40 = vsub.f32 1.0, %v1562_v23 }
 0x1ae   : > { %3490 = vrcp.f32 %v4823_v14  ;;  %v1558_v26 = vor.u32 1.1754944e-38, %v1557_v11  ;;  %v1570_v43 = vand.u32 2147483647, %v4701_v59  ;;  %v1577_v48 = vmul.f32 %v4829_v16, %v4754_v12 }
 0x1af   : > { %v4820_v22 = vpop.f32.mrf.mxu2  ;;  %v4872_v10 = vadd.f32 1.0, %v3487_v63  ;;  %v4876_v4 = vmul.f32 %v1514_v1, %v4332_v36  ;;  %vm1537_vm7 = vweird.f32 %v4758_v51  ;;  %vm1551_vm8 = vweird.f32 %v4636_v27 }
 0x1b0   : > { %v4825_v39 = vpop.f32.mrf.mxu3  ;;  %v4827_v31 = vpop.f32.mrf.mxu0  ;;  %v3059_v23 = vor.u32 %v3273_v50, %v3056_v56  ;;  %v1529_v11 = vsel %vm4831_vm2, %v1528_v30, %v1524_v0  ;;  %v4886_v5 = vadd.f32 %v4758_v51, %v1534_v13  ;;  %vm4890_vm9 = vmor %vm1551_vm8, %vm1552_vm6  ;;  %vm1566_vm10 = vweird.f32 %v4701_v59 }
 0x1b1   : > { %v4837_v62 = vpop.f32.mrf.mxu1  ;;  %v4895_v36 = vor.u32 1.1754944e-38, %v1572_v8  ;;  %v3123_v27 = vor.u32 %v3289_v28, %v3120_v21  ;;  %v1554_v38 = vsel %vm4890_vm9, %v4732_v54, %v1550_v45  ;;  %v1564_v30 = vmul.f32 %v4783_v9, %v1563_v40  ;;  %vm4916_vm11 = vmor %vm1536_vm3, %vm1537_vm7 }
 0x1b2   : > { %v1131_v0 = vadd.f32 %v4625_v42, %v4617_v33  ;;  %2285 = vmatpush.bf16.msra.mxu2 %v3059_v23  ;;  %v1229_v13 = vadd.f32 %v4682_v41, %v4668_v47  ;;  %v1578_v8 = vsub.f32 1.0, %v1577_v48  ;;  %v1133_v28 = vadd.f32 %v4703_v55, %v4684_v25 }
 0x1b3   : > { %v4905_v49 = vpop.eup %3488  ;;  %2334 = vmatpush.bf16.msra.mxu3 %v3123_v27  ;;  %v3055_v21 = vor.u32 %v3274_v17, %v3054_v53  ;;  %v3119_v54 = vor.u32 %v3290_v6, %v3118_v18  ;;  %v1884_v33 = vmul.f32 %v1529_v11, %v4335_v37  ;;  %v1587_v47 = vand.u32 2147483648, %v4754_v12  ;;  %v5808_v27 = vld [vmem:[#allocation33_spill] sm:$0xff] }
 0x1b4   : > { %v4909_v40 = vpop.eup %3490  ;;  %3492 = vrcp.f32 %v4872_v10  ;;  %v1231_v6 = vadd.f32 %v4763_v7, %v4756_v58  ;;  %v1539_v37 = vsel %vm4916_vm11, %v4758_v51, %v4886_v5  ;;  %v1559_v17 = vsel %vm4852_vm5, %v1558_v26, %v1554_v38 }
 0x1b5   : > { %vm1567_vm12 = vweird.f32 %v4783_v9  ;;  %vm1581_vm13 = vweird.f32 %v4754_v12  ;;  %v1910_v18 = vmul.f32 %v4673_v24, %v1133_v28  ;;  %2187 = vmatpush.bf16.msra.mxu0 %v3055_v21  ;;  %2236 = vmatpush.bf16.msra.mxu1 %v3119_v54  ;;  %v1607_v41 = vmul.f32 %v4905_v49, %v4818_v19  ;;  %v5812_v24 = vld [vmem:[#allocation26_spill] sm:$0xff] }
 0x1b6   : > { %v1908_v25 = vmul.f32 %v4585_v57, %v1131_v0  ;;  %v1909_v55 = vmul.f32 %v4664_v61, %v1229_v13  ;;  %v1911_v5 = vmul.f32 %v4768_v52, %v1231_v6  ;;  %v5799_v58 = vand.u32 2147483647, %v4661_v20  ;;  %vm4971_vm1 = vmor %vm1566_vm10, %vm1567_vm12 }
 0x1b7   : > { %v1186_v1 = vpop.f32.mrf.mxu2  ;;  %v1565_v7 = vadd.f32 %v4783_v9, %v1564_v30  ;;  %vm4945_vm15 = vcmp.eq.f32.partialorder %v1570_v43, 8.507059e+37  ;;  %v1579_v53 = vmul.f32 %v4829_v16, %v1578_v8  ;;  %vm1582_vm0 = vweird.f32 %v4829_v16 }
 0x1b8   : > { %v1235_v50 = vpop.f32.mrf.mxu3  ;;  %v1091_v56 = vpop.f32.mrf.mxu0  ;;  %vm4940_vm14 = vcmp.eq.f32.partialorder %v5799_v58, 8.507059e+37  ;;  %v1592_v57 = vmul.f32 %v4909_v40, %v4823_v14  ;;  %v4955_v20 = vadd.f32 %v4378_v35, %v4376_v32  ;;  %v1972_v61 = vpack.c.bf16 %v1910_v18, %v1908_v25  ;;  %v5806_v35 = vld [vmem:[#allocation34_spill] sm:$0xff]  ;;  %vm5006_vm2 = vmor %vm1581_vm13, %vm1582_vm0 }
 0x1b9   : > { %v1140_v45 = vpop.f32.mrf.mxu1  ;;  %v1973_v52 = vpack.c.bf16 %v1911_v5, %v1909_v55  ;;  %v1136_v60 = vadd.f32 %v4774_v29, %v4765_v2  ;;  %v1886_v26 = vmul.f32 %v1559_v17, %v4346_v34  ;;  %v3036_v43 = vmul.f32 -1.442695, %v4387_v46  ;;  %v5807_v29 = vld [vmem:[#allocation32_spill] sm:$0xff] }
 0x1ba   : > { %v1234_v48 = vadd.f32 %v4825_v39, %v4820_v22  ;;  %v1138_v23 = vadd.f32 %v4837_v62, %v4827_v31  ;;  %v4965_v63 = vpop.eup %3492  ;;  %v1608_v34 = vsub.f32 1.0, %v1607_v41  ;;  %v3037_v2 = vmul.f32 -1.442695, %v5806_v35  ;;  %2188 = vmatmul.bf16.vlgmr.msra.gmra.mxu0 %v1972_v61  ;;  %2286 = vmatmul.bf16.vlgmr.msra.gmra.mxu2 %v1972_v61 }
 0x1bb   : > { %v4978_v39 = vadd.f32 %v5808_v27, %v5807_v29  ;;  %v1236_v31 = vadd.f32 %v1235_v50, %v1186_v1  ;;  %v1569_v59 = vsel %vm4971_vm1, %v4783_v9, %v1565_v7  ;;  %v1580_v38 = vadd.f32 %v4829_v16, %v1579_v53  ;;  %2237 = vmatmul.bf16.vlgmr.msra.gmra.mxu1 %v1973_v52 }
 0x1bc   : > { %v1593_v30 = vsub.f32 1.0, %v1592_v57  ;;  %2335 = vmatmul.bf16.vlgmr.msra.gmra.mxu3 %v1973_v52  ;;  %v1141_v0 = vadd.f32 %v1140_v45, %v1091_v56  ;;  %v3038_v8 = vmul.f32 -1.442695, %v4955_v20  ;;  %v1912_v28 = vmul.f32 %v4797_v3, %v1136_v60  ;;  %v5813_v57 = vld [vmem:[#allocation27_spill] sm:$0xff] }
 0x1bd   : > { %v1914_v21 = vmul.f32 %v4803_v15, %v1138_v23  ;;  %v1915_v1 = vmul.f32 %v4876_v4, %v1236_v31  ;;  %v1622_v50 = vmul.f32 %v4965_v63, %v4872_v10  ;;  %3494 = vpow2.f32 %v3036_v43  ;;  %v5809_v4 = vld [vmem:[#allocation53_spill] sm:$0xff] }
 0x1be   : > { %v1913_v9 = vmul.f32 %v4800_v44, %v1234_v48  ;;  %v1609_v42 = vmul.f32 %v4905_v49, %v1608_v34  ;;  %3496 = vpow2.f32 %v3037_v2  ;;  %v3039_v56 = vmul.f32 -1.442695, %v4978_v39 }
 0x1bf   : > { %v1189_v11 = vpop.f32.mrf.mxu2  ;;  %v1974_v45 = vpack.c.bf16 %v1914_v21, %v1912_v28  ;;  %v1585_v6 = vand.u32 2147483647, %v4754_v12  ;;  %v1916_v3 = vmul.f32 %v1884_v33, %v1141_v0  ;;  %v1544_v18 = vsel %vm4940_vm14, %v5809_v4, %v1539_v37  ;;  %v5820_v4 = vld [vmem:[#allocation30_spill] sm:$0xff] }
 0x1c0   : > { %v1238_v22 = vpop.f32.mrf.mxu3  ;;  %v1093_v62 = vpop.f32.mrf.mxu0  ;;  %v4994_v17 = vpack.c.bf16 %v1915_v1, %v1913_v9  ;;  %v1574_v44 = vsel %vm4945_vm15, %v4895_v36, %v1569_v59  ;;  %v1588_v33 = vor.u32 1.1754944e-38, %v1587_v47  ;;  %3498 = vpow2.f32 %v3038_v8  ;;  %v5817_v8 = vld [vmem:[#allocation37_spill] sm:$0xff] }
 0x1c1   : > { %v1142_v13 = vpop.f32.mrf.mxu1  ;;  %v1584_v37 = vsel %vm5006_vm2, %v4829_v16, %v1580_v38  ;;  %v1623_v25 = vsub.f32 1.0, %v1622_v50  ;;  %v1239_v55 = vadd.f32 %v1238_v22, %v1189_v11  ;;  %v1594_v58 = vmul.f32 %v4909_v40, %v1593_v30  ;;  %v5816_v30 = vld [vmem:[#allocation28_spill] sm:$0xff] }
 0x1c2   : > { %v1143_v54 = vadd.f32 %v1142_v13, %v1093_v62  ;;  %v1610_v51 = vadd.f32 %v4905_v49, %v1609_v42  ;;  %vm1612_vm3 = vweird.f32 %v4905_v49  ;;  %3500 = vpow2.f32 %v3039_v56 }
 0x1c3   : > { %v3495_v47 = vpop.eup %3494  ;;  %v1885_v53 = vmul.f32 %v1544_v18, %v5812_v24  ;;  %v1887_v61 = vmul.f32 %v1574_v44, %v5813_v57  ;;  %v1617_v16 = vand.u32 2147483648, %v4818_v19  ;;  %vm1586_vm4 = vcmp.eq.f32.partialorder %v1585_v6, 8.507059e+37  ;;  %v5824_v44 = vld [vmem:[#allocation36_spill] sm:$0xff] }
 0x1c4   : > { %v1918_v15 = vmul.f32 %v1886_v26, %v1143_v54  ;;  %v3497_v26 = vpop.eup %3496  ;;  %vm1596_vm5 = vweird.f32 %v4823_v14  ;;  %vm1611_vm6 = vweird.f32 %v4818_v19  ;;  %v1615_v43 = vand.u32 2147483647, %v4818_v19 }
 0x1c5   : > { %v1589_v48 = vsel %vm1586_vm4, %v1588_v33, %v1584_v37  ;;  %vm5028_vm7 = vmor %vm1611_vm6, %vm1612_vm3  ;;  %v1624_v11 = vmul.f32 %v4965_v63, %v1623_v25  ;;  %v1917_v32 = vmul.f32 %v1885_v53, %v1239_v55  ;;  %v1595_v29 = vadd.f32 %v4909_v40, %v1594_v58  ;;  %v5825_v25 = vld [vmem:[#allocation39_spill] sm:$0xff]  ;;  %v5826_v55 = vld [vmem:[#allocation40_spill] sm:$0xff] }
 0x1c6   : > { %v5015_v36 = vpack.c.bf16 %v1918_v15, %v1916_v3  ;;  %v3499_v2 = vpop.eup %3498  ;;  %vm1597_vm8 = vweird.f32 %v4909_v40  ;;  %v1614_v19 = vsel %vm5028_vm7, %v4905_v49, %v1610_v51  ;;  %v5038_v27 = vadd.f32 1.0, %v3495_v47  ;;  %v5827_v47 = vld [vmem:[#allocation38_spill] sm:$0xff] }
 0x1c7   : > { %v1191_v5 = vpop.f32.mrf.mxu2  ;;  %v1600_v31 = vand.u32 2147483647, %v4823_v14  ;;  %v1618_v22 = vor.u32 1.1754944e-38, %v1617_v16  ;;  %v5041_v62 = vadd.f32 1.0, %v3497_v26  ;;  %v1888_v0 = vmul.f32 %v1589_v48, %v5816_v30  ;;  %vm5050_vm10 = vmor %vm1596_vm5, %vm1597_vm8 }
 0x1c8   : > { %v1240_v7 = vpop.f32.mrf.mxu3  ;;  %v1096_v12 = vpop.f32.mrf.mxu0  ;;  %v1602_v13 = vand.u32 2147483648, %v4823_v14  ;;  %vm1616_vm9 = vcmp.eq.f32.partialorder %v1615_v43, 8.507059e+37  ;;  %v3040_v28 = vmul.f32 -1.442695, %v5817_v8  ;;  %v1625_v1 = vadd.f32 %v4965_v63, %v1624_v11  ;;  %v5828_v43 = vld [vmem:[#allocation29_spill] sm:$0xff] }
 0x1c9   : > { %v1241_v52 = vadd.f32 %v1240_v7, %v1191_v5  ;;  %v1145_v60 = vpop.f32.mrf.mxu1  ;;  %v3501_v38 = vpop.eup %3500  ;;  %v1619_v21 = vsel %vm1616_vm9, %v1618_v22, %v1614_v19  ;;  %vm1627_vm11 = vweird.f32 %v4965_v63  ;;  %v5056_v50 = vadd.f32 1.0, %v3499_v2 }
 0x1ca   : > { %v1599_v9 = vsel %vm5050_vm10, %v4909_v40, %v1595_v29  ;;  %v1632_v54 = vand.u32 2147483648, %v4872_v10  ;;  %3502 = vrcp.f32 %v5038_v27  ;;  %2193 = vmatmul.bf16.gmra.mxu0 %v1974_v45  ;;  %2291 = vmatmul.bf16.gmra.mxu2 %v1974_v45  ;;  %v1146_v14 = vadd.f32 %v1145_v60, %v1096_v12 }
 0x1cb   : > { %v1919_v34 = vmul.f32 %v1887_v61, %v1241_v52  ;;  %vm1626_vm12 = vweird.f32 %v4872_v10  ;;  %v1630_v6 = vand.u32 2147483647, %v4872_v10  ;;  %3504 = vrcp.f32 %v5041_v62  ;;  %2242 = vmatmul.bf16.gmra.mxu1 %v4994_v17  ;;  %v5823_v10 = vld [vmem:[#allocation35_spill] sm:$0xff] }
 0x1cc   : > { %v5066_v3 = vadd.f32 1.0, %v3501_v38  ;;  %2340 = vmatmul.bf16.gmra.mxu3 %v4994_v17  ;;  %v1890_v18 = vmul.f32 %v1619_v21, %v5820_v4  ;;  %vm5073_vm13 = vmor %vm1626_vm12, %vm1627_vm11  ;;  %3506 = vpow2.f32 %v3040_v28  ;;  %v5079_v41 = vadd.f32 %v5824_v44, %v5823_v10 }
 0x1cd   : > { %v5043_v59 = vpack.c.bf16 %v1919_v34, %v1917_v32  ;;  %v1603_v37 = vor.u32 1.1754944e-38, %v1602_v13  ;;  %v1629_v17 = vsel %vm5073_vm13, %v4965_v63, %v1625_v1  ;;  %3508 = vrcp.f32 %v5056_v50  ;;  %v5829_v34 = vld [vmem:[#allocation31_spill] sm:$0xff] }
 0x1ce   : > { %v5087_v5 = vadd.f32 %v5826_v55, %v5825_v25  ;;  %vm1601_vm14 = vcmp.eq.f32.partialorder %v1600_v31, 8.507059e+37  ;;  %v1633_v58 = vor.u32 1.1754944e-38, %v1632_v54  ;;  %v1920_v51 = vmul.f32 %v1888_v0, %v1146_v14 }
 0x1cf   : > { %v1194_v42 = vpop.f32.mrf.mxu2  ;;  %v1604_v12 = vsel %vm1601_vm14, %v1603_v37, %v1599_v9  ;;  %vm1631_vm15 = vcmp.eq.f32.partialorder %v1630_v6, 8.507059e+37  ;;  %3510 = vrcp.f32 %v5066_v3  ;;  %v3041_v24 = vmul.f32 -1.442695, %v5827_v47  ;;  %v5831_v37 = vld [vmem:[#allocation42_spill] sm:$0xff] }
 0x1d0   : > { %v1243_v56 = vpop.f32.mrf.mxu3  ;;  %v1098_v40 = vpop.f32.mrf.mxu0  ;;  %v1634_v57 = vsel %vm1631_vm15, %v1633_v58, %v1629_v17  ;;  %v3042_v63 = vmul.f32 -1.442695, %v5079_v41  ;;  %v3043_v52 = vmul.f32 -1.442695, %v5087_v5  ;;  %v1889_v48 = vmul.f32 %v1604_v12, %v5828_v43 }
 0x1d1   : > { %v1147_v15 = vpop.f32.mrf.mxu1  ;;  %v5091_v53 = vpop.eup %3502  ;;  %v1244_v60 = vadd.f32 %v1243_v56, %v1194_v42  ;;  %v1891_v2 = vmul.f32 %v1634_v57, %v5829_v34  ;;  %3512 = vpow2.f32 %v3041_v24  ;;  %v1645_v56 = vand.u32 2147483647, %v5038_v27 }
 0x1d2   : > { %v1148_v33 = vadd.f32 %v1147_v15, %v1098_v40  ;;  %v5096_v16 = vpop.eup %3504  ;;  %v1637_v29 = vmul.f32 %v5091_v53, %v5038_v27  ;;  %3514 = vpow2.f32 %v3042_v63  ;;  %vm1641_vm0 = vweird.f32 %v5038_v27 }
 0x1d3   : > { %v3507_v26 = vpop.eup %3506  ;;  %v1652_v31 = vmul.f32 %v5096_v16, %v5041_v62  ;;  %3516 = vpow2.f32 %v3043_v52  ;;  %v1921_v38 = vmul.f32 %v1889_v48, %v1244_v60  ;;  %v1647_v45 = vand.u32 2147483648, %v5038_v27  ;;  %v5836_v60 = vld [vmem:[#allocation45_spill] sm:$0xff] }
 0x1d4   : > { %v1922_v7 = vmul.f32 %v1890_v18, %v1148_v33  ;;  %v5100_v32 = vpop.eup %3508  ;;  %v5115_v49 = vadd.f32 1.0, %v3507_v26  ;;  %v1638_v21 = vsub.f32 1.0, %v1637_v29  ;;  %vm1656_vm1 = vweird.f32 %v5041_v62  ;;  %v5830_v33 = vld [vmem:[#allocation41_spill] sm:$0xff] }
 0x1d5   : > { %v5107_v22 = vpop.eup %3510  ;;  %v1667_v28 = vmul.f32 %v5100_v32, %v5056_v50  ;;  %v1653_v9 = vsub.f32 1.0, %v1652_v31  ;;  %v5140_v17 = vadd.f32 %v5831_v37, %v5830_v33  ;;  %v1660_v25 = vand.u32 2147483647, %v5041_v62 }
 0x1d6   : > { %v5094_v61 = vpack.c.bf16 %v1922_v7, %v1920_v51  ;;  %v1682_v54 = vmul.f32 %v5107_v22, %v5066_v3  ;;  %3518 = vrcp.f32 %v5115_v49  ;;  %v1639_v18 = vmul.f32 %v5091_v53, %v1638_v21  ;;  %v5832_v51 = vld [vmem:[#allocation43_spill] sm:$0xff]  ;;  %v5833_v7 = vld [vmem:[#allocation44_spill] sm:$0xff] }
 0x1d7   : > { %v1196_v23 = vpop.f32.mrf.mxu2  ;;  %v3513_v14 = vpop.eup %3512  ;;  %v1668_v6 = vsub.f32 1.0, %v1667_v28  ;;  %v1654_v10 = vmul.f32 %v5096_v16, %v1653_v9  ;;  %v1662_v55 = vand.u32 2147483648, %v5041_v62  ;;  %v5148_v12 = vadd.f32 %v5833_v7, %v5832_v51  ;;  %v5839_v28 = vld [vmem:[#allocation48_spill] sm:$0xff] }
 0x1d8   : > { %v1245_v11 = vpop.f32.mrf.mxu3  ;;  %v5109_v0 = vpop.f32.mrf.mxu0  ;;  %v5136_v44 = vadd.f32 1.0, %v3513_v14  ;;  %vm5150_vm2 = vcmp.eq.f32.partialorder %v1645_v56, 8.507059e+37  ;;  %vm1671_vm3 = vweird.f32 %v5056_v50  ;;  %v1675_v57 = vand.u32 2147483647, %v5056_v50 }
 0x1d9   : > { %v1246_v19 = vadd.f32 %v1245_v11, %v1196_v23  ;;  %v5111_v13 = vpop.f32.mrf.mxu1  ;;  %v3515_v42 = vpop.eup %3514  ;;  %v1669_v24 = vmul.f32 %v5100_v32, %v1668_v6  ;;  %v1640_v52 = vadd.f32 %v5091_v53, %v1639_v18  ;;  %vm1642_vm4 = vweird.f32 %v5091_v53 }
 0x1da   : > { %2198 = vmatmul.bf16.gmra.mxu0 %v5015_v36  ;;  %2296 = vmatmul.bf16.gmra.mxu2 %v5015_v36  ;;  %v3517_v4 = vpop.eup %3516  ;;  %v1683_v36 = vsub.f32 1.0, %v1682_v54  ;;  %v5144_v58 = vadd.f32 1.0, %v3515_v42  ;;  %vm1657_vm5 = vweird.f32 %v5096_v16  ;;  %v3044_v26 = vmul.f32 -1.442695, %v5836_v60  ;;  %vm5179_vm6 = vmor %vm1641_vm0, %vm1642_vm4 }
 0x1db   : > { %v1923_v30 = vmul.f32 %v1891_v2, %v1246_v19  ;;  %2247 = vmatmul.bf16.gmra.mxu1 %v5043_v59  ;;  %v5157_v63 = vadd.f32 1.0, %v3517_v4  ;;  %v1655_v11 = vadd.f32 %v5096_v16, %v1654_v10  ;;  %3520 = vrcp.f32 %v5136_v44  ;;  %vm5195_vm8 = vmor %vm1656_vm1, %vm1657_vm5 }
 0x1dc   : > { %2345 = vmatmul.bf16.gmra.mxu3 %v5043_v59  ;;  %v5167_v23 = vpop.eup %3518  ;;  %v1684_v34 = vmul.f32 %v5107_v22, %v1683_v36  ;;  %v3046_v2 = vmul.f32 -1.442695, %v5140_v17  ;;  %v1677_v29 = vand.u32 2147483648, %v5056_v50  ;;  %v1690_v19 = vand.u32 2147483647, %v5066_v3 }
 0x1dd   : > { %v5117_v1 = vpack.c.bf16 %v1923_v30, %v1921_v38  ;;  %3522 = vrcp.f32 %v5144_v58  ;;  %v3047_v31 = vmul.f32 -1.442695, %v5148_v12  ;;  %v1670_v30 = vadd.f32 %v5100_v32, %v1669_v24 }
 0x1de   : > { %vm1672_vm7 = vweird.f32 %v5100_v32  ;;  %3524 = vrcp.f32 %v5157_v63  ;;  %v3045_v21 = vmul.f32 -1.442695, %v5839_v28  ;;  %vm1687_vm9 = vweird.f32 %v5107_v22 }
 0x1df   : > { %v5125_v40 = vpop.f32.mrf.mxu2  ;;  %v1692_v14 = vand.u32 2147483648, %v5066_v3  ;;  %v1697_v42 = vmul.f32 %v5167_v23, %v5115_v49  ;;  %3526 = vpow2.f32 %v3044_v26  ;;  %v1644_v56 = vsel %vm5179_vm6, %v5091_v53, %v1640_v52  ;;  %vm5214_vm11 = vmor %vm1671_vm3, %vm1672_vm7 }
 0x1e0   : > { %v5127_v15 = vpop.f32.mrf.mxu3  ;;  %v5163_v43 = vpop.f32.mrf.mxu0  ;;  %v1659_v62 = vsel %vm5195_vm8, %v5096_v16, %v1655_v11  ;;  %v1685_v6 = vadd.f32 %v5107_v22, %v1684_v34  ;;  %3528 = vpow2.f32 %v3046_v2  ;;  %v1648_v4 = vor.u32 1.1754944e-38, %v1647_v45 }
 0x1e1   : > { %v5165_v48 = vpop.f32.mrf.mxu1  ;;  %vm1661_vm10 = vcmp.eq.f32.partialorder %v1660_v25, 8.507059e+37  ;;  %v1663_v18 = vor.u32 1.1754944e-38, %v1662_v55  ;;  %3530 = vpow2.f32 %v3047_v31  ;;  %v5218_v53 = vpop.eup %3520  ;;  %v1674_v16 = vsel %vm5214_vm11, %v5100_v32, %v1670_v30 }
 0x1e2   : > { %vm1686_vm12 = vweird.f32 %v5066_v3  ;;  %v1707_v45 = vand.u32 2147483648, %v5115_v49  ;;  %3532 = vpow2.f32 %v3045_v21  ;;  %v1649_v50 = vsel %vm5150_vm2, %v1648_v4, %v1644_v56  ;;  %v5848_v56 = vld [vmem:[#allocation46_spill] sm:$0xff] }
 0x1e3   : > { %v5225_v36 = vpop.eup %3522  ;;  %v1664_v33 = vsel %vm1661_vm10, %v1663_v18, %v1659_v62  ;;  %v1678_v37 = vor.u32 1.1754944e-38, %v1677_v29  ;;  %vm5231_vm13 = vmor %vm1686_vm12, %vm1687_vm9  ;;  %v1698_v55 = vsub.f32 1.0, %v1697_v42  ;;  %vm1676_vm14 = vcmp.eq.f32.partialorder %v1675_v57, 8.507059e+37  ;;  %v5849_v62 = vld [vmem:[#allocation47_spill] sm:$0xff] }
 0x1e4   : > { %v5235_v32 = vpop.eup %3524  ;;  %v1689_v3 = vsel %vm5231_vm13, %v5107_v22, %v1685_v6  ;;  %vm5240_vm15 = vcmp.eq.f32.partialorder %v1690_v19, 8.507059e+37  ;;  %v1693_v7 = vor.u32 1.1754944e-38, %v1692_v14  ;;  %vm1701_vm0 = vweird.f32 %v5115_v49 }
 0x1e5   : > { %v3527_v59 = vpop.eup %3526  ;;  %v1679_v24 = vsel %vm1676_vm14, %v1678_v37, %v1674_v16  ;;  %v1705_v52 = vand.u32 2147483647, %v5115_v49  ;;  %v1712_v26 = vmul.f32 %v5218_v53, %v5136_v44  ;;  %v1892_v22 = vmul.f32 %v1649_v50, %v4387_v46  ;;  %v5850_v16 = vld [vmem:[#allocation49_spill] sm:$0xff] }
 0x1e6   : > { %v3529_v34 = vpop.eup %3528  ;;  %v1893_v2 = vmul.f32 %v1664_v33, %v5806_v35  ;;  %v5254_v29 = vor.u32 1.1754944e-38, %v1707_v45  ;;  %v1727_v19 = vmul.f32 %v5225_v36, %v5144_v58  ;;  %v1694_v21 = vsel %vm5240_vm15, %v1693_v7, %v1689_v3  ;;  %v5851_v45 = vld [vmem:[#allocation50_spill] sm:$0xff] }
 0x1e7   : > { %v5187_v9 = vpop.f32.mrf.mxu2  ;;  %v3531_v30 = vpop.eup %3530  ;;  %v1699_v46 = vmul.f32 %v5167_v23, %v1698_v55  ;;  %vm1702_vm1 = vweird.f32 %v5167_v23  ;;  %v1742_v35 = vmul.f32 %v5235_v32, %v5157_v63  ;;  %v1894_v27 = vmul.f32 %v1679_v24, %v4955_v20 }
 0x1e8   : > { %v5189_v54 = vpop.f32.mrf.mxu3  ;;  %v5248_v11 = vpop.f32.mrf.mxu0  ;;  %v1720_v14 = vand.u32 2147483647, %v5136_v44  ;;  %v5274_v42 = vadd.f32 1.0, %v3527_v59  ;;  %v5278_v6 = vadd.f32 %v5849_v62, %v5848_v56  ;;  %v1713_v4 = vsub.f32 1.0, %v1712_v26  ;;  %vm5315_vm3 = vmor %vm1701_vm0, %vm1702_vm1 }
 0x1e9   : > { %v5250_v57 = vpop.f32.mrf.mxu1  ;;  %v1722_v18 = vand.u32 2147483648, %v5136_v44  ;;  %v5281_v10 = vadd.f32 1.0, %v3529_v34  ;;  %v5285_v50 = vadd.f32 %v5851_v45, %v5850_v16  ;;  %v1728_v20 = vsub.f32 1.0, %v1727_v19 }
 0x1ea   : > { %2203 = vmatmul.bf16.gmra.mxu0 %v5094_v61  ;;  %2301 = vmatmul.bf16.gmra.mxu2 %v5094_v61  ;;  %v3533_v61 = vpop.eup %3532  ;;  %v5288_v33 = vadd.f32 1.0, %v3531_v30  ;;  %v1153_v37 = vadd.f32 %v5165_v48, %v5163_v43  ;;  %v1700_v25 = vadd.f32 %v5167_v23, %v1699_v46  ;;  %vm1716_vm2 = vweird.f32 %v5136_v44 }
 0x1eb   : > { %2252 = vmatmul.bf16.gmra.mxu1 %v5117_v1  ;;  %v1743_v55 = vsub.f32 1.0, %v1742_v35  ;;  %v5294_v3 = vadd.f32 1.0, %v3533_v61  ;;  %v1251_v51 = vadd.f32 %v5189_v54, %v5187_v9  ;;  %v1735_v7 = vand.u32 2147483647, %v5144_v58  ;;  %v5852_v54 = vld [vmem:[#allocation51_spill] sm:$0xff] }
 0x1ec   : > { %2350 = vmatmul.bf16.gmra.mxu3 %v5117_v1  ;;  %v1895_v1 = vmul.f32 %v1694_v21, %v4978_v39  ;;  %3534 = vrcp.f32 %v5274_v42  ;;  %v3050_v39 = vmul.f32 -1.442695, %v5278_v6  ;;  %v1151_v59 = vadd.f32 %v5111_v13, %v5109_v0 }
 0x1ed   : > { %v1714_v43 = vmul.f32 %v5218_v53, %v1713_v4  ;;  %3536 = vrcp.f32 %v5281_v10  ;;  %v3051_v48 = vmul.f32 -1.442695, %v5285_v50  ;;  %v1249_v24 = vadd.f32 %v5127_v15, %v5125_v40  ;;  %v5855_v40 = vld [vmem:[#allocation52_spill] sm:$0xff] }
 0x1ee   : > { %v1729_v9 = vmul.f32 %v5225_v36, %v1728_v20  ;;  %3538 = vrcp.f32 %v5288_v33  ;;  %v3048_v26 = vmul.f32 -1.442695, %v5852_v54  ;;  %v1926_v34 = vmul.f32 %v1894_v27, %v1153_v37 }
 0x1ef   : > { %v5260_v31 = vpop.f32.mrf.mxu2  ;;  %v1744_v13 = vmul.f32 %v5235_v32, %v1743_v55  ;;  %3540 = vrcp.f32 %v5294_v3  ;;  %v3049_v15 = vmul.f32 -1.442695, %v5855_v40  ;;  %v1927_v19 = vmul.f32 %v1895_v1, %v1251_v51 }
 0x1f0   : > { %v5262_v38 = vpop.f32.mrf.mxu3  ;;  %v5322_v30 = vpop.f32.mrf.mxu0  ;;  %v1704_v46 = vsel %vm5315_vm3, %v5167_v23, %v1700_v25  ;;  %v1737_v35 = vand.u32 2147483648, %v5144_v58  ;;  %3542 = vpow2.f32 %v3050_v39  ;;  %v1924_v61 = vmul.f32 %v1892_v22, %v1151_v59 }
 0x1f1   : > { %v1157_v21 = vpop.f32.mrf.mxu1  ;;  %vm1717_vm4 = vweird.f32 %v5218_v53  ;;  %vm1732_vm5 = vweird.f32 %v5225_v36  ;;  %3544 = vpow2.f32 %v3051_v48  ;;  %v1925_v62 = vmul.f32 %v1893_v2, %v1249_v24 }
 0x1f2   : > { %v5332_v4 = vpop.eup %3534  ;;  %v1715_v16 = vadd.f32 %v5218_v53, %v1714_v43  ;;  %v1730_v45 = vadd.f32 %v5225_v36, %v1729_v9  ;;  %3546 = vpow2.f32 %v3048_v26  ;;  %v1980_v23 = vpack.c.bf16 %v1926_v34, %v1924_v61  ;;  %vm5348_vm8 = vmor %vm1716_vm2, %vm1717_vm4 }
 0x1f3   : > { %v5336_v1 = vpop.eup %3536  ;;  %v1745_v22 = vadd.f32 %v5235_v32, %v1744_v13  ;;  %vm1747_vm6 = vweird.f32 %v5235_v32  ;;  %3548 = vpow2.f32 %v3049_v15  ;;  %v1981_v20 = vpack.c.bf16 %v1927_v19, %v1925_v62 }
 0x1f4   : > { %v5340_v37 = vpop.eup %3538  ;;  %vm1706_vm7 = vcmp.eq.f32.partialorder %v1705_v52, 8.507059e+37  ;;  %vm1731_vm9 = vweird.f32 %v5144_v58  ;;  %v1750_v25 = vand.u32 2147483647, %v5157_v63  ;;  %v1752_v55 = vand.u32 2147483648, %v5157_v63 }
 0x1f5   : > { %v5355_v51 = vpop.eup %3540  ;;  %v1709_v39 = vsel %vm1706_vm7, %v5254_v29, %v1704_v46  ;;  %vm5360_vm10 = vcmp.eq.f32.partialorder %v1720_v14, 8.507059e+37  ;;  %vm5366_vm11 = vmor %vm1731_vm9, %vm1732_vm5  ;;  %vm1746_vm12 = vweird.f32 %v5157_v63  ;;  %v1719_v59 = vsel %vm5348_vm8, %v5218_v53, %v1715_v16 }
 0x1f6   : > { %v3543_v58 = vpop.eup %3542  ;;  %v1723_v29 = vor.u32 1.1754944e-38, %v1722_v18  ;;  %v1734_v14 = vsel %vm5366_vm11, %v5225_v36, %v1730_v45  ;;  %vm5381_vm13 = vmor %vm1746_vm12, %vm1747_vm6  ;;  %v1787_v63 = vmul.f32 %v5336_v1, %v5281_v10  ;;  %vm1736_vm14 = vcmp.eq.f32.partialorder %v1735_v7, 8.507059e+37 }
 0x1f7   : > { %v5328_v27 = vpop.f32.mrf.mxu2  ;;  %v3545_v48 = vpop.eup %3544  ;;  %v1738_v53 = vor.u32 1.1754944e-38, %v1737_v35  ;;  %v1749_v44 = vsel %vm5381_vm13, %v5235_v32, %v1745_v22  ;;  %v1802_v36 = vmul.f32 %v5340_v37, %v5288_v33  ;;  %v1896_v24 = vmul.f32 %v1709_v39, %v5817_v8 }
 0x1f8   : > { %v1255_v56 = vpop.f32.mrf.mxu3  ;;  %v3547_v18 = vpop.eup %3546  ;;  %vm1751_vm15 = vcmp.eq.f32.partialorder %v1750_v25, 8.507059e+37  ;;  %v1753_v9 = vor.u32 1.1754944e-38, %v1752_v55  ;;  %v1757_v26 = vmul.f32 %v5332_v4, %v5274_v42  ;;  %v1724_v7 = vsel %vm5360_vm10, %v1723_v29, %v1719_v59 }
 0x1f9   : > { %v3549_v34 = vpop.eup %3548  ;;  %v1739_v0 = vsel %vm1736_vm14, %v1738_v53, %v1734_v14  ;;  %v1772_v32 = vmul.f32 %v5355_v51, %v5294_v3  ;;  %v5399_v13 = vadd.f32 1.0, %v3543_v58  ;;  %v5401_v15 = vpop.f32.mrf.mxu0  ;;  %v1788_v46 = vsub.f32 1.0, %v1787_v63 }
 0x1fa   : > { %2208 = vmatmul.bf16.gmra.mxu0 %v1980_v23  ;;  %2306 = vmatmul.bf16.gmra.mxu2 %v1980_v23  ;;  %v5403_v19 = vpop.f32.mrf.mxu1  ;;  %v1754_v8 = vsel %vm1751_vm15, %v1753_v9, %v1749_v44  ;;  %v5405_v35 = vadd.f32 1.0, %v3545_v48  ;;  %v1158_v61 = vadd.f32 %v1157_v21, %v5322_v30  ;;  %v1767_v45 = vand.u32 2147483648, %v5274_v42 }
 0x1fb   : > { %2257 = vmatmul.bf16.gmra.mxu1 %v1981_v20  ;;  %v1803_v23 = vsub.f32 1.0, %v1802_v36  ;;  %v5413_v22 = vadd.f32 1.0, %v3547_v18  ;;  %v1898_v2 = vmul.f32 %v1739_v0, %v5079_v41  ;;  %v1758_v25 = vsub.f32 1.0, %v1757_v26 }
 0x1fc   : > { %2355 = vmatmul.bf16.gmra.mxu3 %v1981_v20  ;;  %v1256_v20 = vadd.f32 %v1255_v56, %v5328_v27  ;;  %v5417_v55 = vadd.f32 1.0, %v3549_v34  ;;  %v1156_v39 = vadd.f32 %v5250_v57, %v5248_v11  ;;  %v1899_v30 = vmul.f32 %v1754_v8, %v5087_v5 }
 0x1fd   : > { %v1773_v21 = vsub.f32 1.0, %v1772_v32  ;;  %3550 = vrcp.f32 %v5399_v13  ;;  %v1254_v49 = vadd.f32 %v5262_v38, %v5260_v31  ;;  %v1765_v52 = vand.u32 2147483647, %v5274_v42 }
 0x1fe   : > { %v1789_v27 = vmul.f32 %v5336_v1, %v1788_v46  ;;  %3552 = vrcp.f32 %v5405_v35  ;;  %v1930_v41 = vmul.f32 %v1898_v2, %v1158_v61  ;;  %v1897_v56 = vmul.f32 %v1724_v7, %v5827_v47 }
 0x1ff   : > { %v5408_v62 = vpop.f32.mrf.mxu2  ;;  %v1804_v58 = vmul.f32 %v5340_v37, %v1803_v23  ;;  %3554 = vrcp.f32 %v5413_v22  ;;  %v1931_v5 = vmul.f32 %v1899_v30, %v1256_v20  ;;  %v1759_v11 = vmul.f32 %v5332_v4, %v1758_v25 }
 0x200   : > { %v5410_v16 = vpop.f32.mrf.mxu3  ;;  %3556 = vrcp.f32 %v5417_v55  ;;  %v1928_v57 = vmul.f32 %v1896_v24, %v1156_v39  ;;  %vm1761_vm0 = vweird.f32 %v5274_v42  ;;  %v1768_v31 = vor.u32 1.1754944e-38, %v1767_v45 }
 0x201   : > { %v1774_v38 = vmul.f32 %v5355_v51, %v1773_v21  ;;  %v1929_v59 = vmul.f32 %v1897_v56, %v1254_v49  ;;  %vm5435_vm1 = vcmp.eq.f32.partialorder %v1765_v52, 8.507059e+37  ;;  %v1790_v47 = vadd.f32 %v5336_v1, %v1789_v27  ;;  %v1113_v44 = vpop.f32.mrf.mxu0 }
 0x202   : > { %vm1791_vm2 = vweird.f32 %v5281_v10  ;;  %vm1792_vm3 = vweird.f32 %v5336_v1  ;;  %v1982_v14 = vpack.c.bf16 %v1930_v41, %v1928_v57  ;;  %v1797_v63 = vand.u32 2147483648, %v5281_v10  ;;  %v1162_v36 = vpop.f32.mrf.mxu1 }
 0x203   : > { %v5442_v43 = vpop.eup %3550  ;;  %v1805_v48 = vadd.f32 %v5340_v37, %v1804_v58  ;;  %vm1807_vm4 = vweird.f32 %v5340_v37  ;;  %v1983_v53 = vpack.c.bf16 %v1931_v5, %v1929_v59  ;;  %v1760_v24 = vadd.f32 %v5332_v4, %v1759_v11  ;;  %vm5461_vm7 = vmor %vm1791_vm2, %vm1792_vm3 }
 0x204   : > { %v5447_v18 = vpop.eup %3552  ;;  %vm1762_vm5 = vweird.f32 %v5332_v4  ;;  %v1795_v9 = vand.u32 2147483647, %v5281_v10  ;;  %v1812_v26 = vand.u32 2147483648, %v5288_v33  ;;  %v1775_v32 = vadd.f32 %v5355_v51, %v1774_v38  ;;  %v1945_v10 = vld [vmem:[#allocation2 + $0x68] sm:$0xff] }
 0x205   : > { %v5453_v0 = vpop.eup %3554  ;;  %vm1777_vm6 = vweird.f32 %v5355_v51  ;;  %vm1806_vm8 = vweird.f32 %v5288_v33  ;;  %v1810_v46 = vand.u32 2147483647, %v5288_v33  ;;  %vm1776_vm9 = vweird.f32 %v5294_v3  ;;  %vm5486_vm11 = vmor %vm1761_vm0, %vm1762_vm5 }
 0x206   : > { %v5467_v61 = vpop.eup %3556  ;;  %v1782_v45 = vand.u32 2147483648, %v5294_v3  ;;  %v1794_v23 = vsel %vm5461_vm7, %v5336_v1, %v1790_v47  ;;  %vm5476_vm10 = vmor %vm1806_vm8, %vm1807_vm4  ;;  %v1847_v20 = vmul.f32 %v5442_v43, %v5399_v13  ;;  %v1780_v1 = vand.u32 2147483647, %v5294_v3 }
 0x207   : > { %v1211_v34 = vpop.f32.mrf.mxu2  ;;  %v1798_v2 = vor.u32 1.1754944e-38, %v1797_v63  ;;  %v1809_v25 = vsel %vm5476_vm10, %v5340_v37, %v1805_v48  ;;  %v1862_v39 = vmul.f32 %v5447_v18, %v5405_v35  ;;  %v1764_v42 = vsel %vm5486_vm11, %v5332_v4, %v1760_v24  ;;  %vm5503_vm12 = vmor %vm1776_vm9, %vm1777_vm6 }
 0x208   : > { %v1260_v7 = vpop.f32.mrf.mxu3  ;;  %vm1796_vm13 = vcmp.eq.f32.partialorder %v1795_v9, 8.507059e+37  ;;  %v1813_v21 = vor.u32 1.1754944e-38, %v1812_v26  ;;  %v1817_v37 = vmul.f32 %v5453_v0, %v5413_v22  ;;  %v1779_v49 = vsel %vm5503_vm12, %v5355_v51, %v1775_v32 }
 0x209   : > { %v1799_v52 = vsel %vm1796_vm13, %v1798_v2, %v1794_v23  ;;  %vm1811_vm14 = vcmp.eq.f32.partialorder %v1810_v46, 8.507059e+37  ;;  %v1832_v4 = vmul.f32 %v5467_v61, %v5417_v55  ;;  %v1783_v27 = vor.u32 1.1754944e-38, %v1782_v45  ;;  %v5522_v48 = vpop.f32.mrf.mxu0 }
 0x20a   : > { %2213 = vmatmul.bf16.gmra.mxu0 %v1982_v14  ;;  %2311 = vmatmul.bf16.gmra.mxu2 %v1982_v14  ;;  %v1814_v3 = vsel %vm1811_vm14, %v1813_v21, %v1809_v25  ;;  %v1848_v41 = vsub.f32 1.0, %v1847_v20  ;;  %v1163_v56 = vadd.f32 %v1162_v36, %v1113_v44  ;;  %v1769_v58 = vsel %vm5435_vm1, %v1768_v31, %v1764_v42  ;;  %v5524_v29 = vpop.f32.mrf.mxu1 }
 0x20b   : > { %2262 = vmatmul.bf16.gmra.mxu1 %v1983_v53  ;;  %vm1781_vm15 = vcmp.eq.f32.partialorder %v1780_v1, 8.507059e+37  ;;  %v1863_v5 = vsub.f32 1.0, %v1862_v39  ;;  %v1261_v11 = vadd.f32 %v1260_v7, %v1211_v34  ;;  %v1902_v38 = vmul.f32 %v1799_v52, %v5140_v17 }
 0x20c   : > { %2360 = vmatmul.bf16.gmra.mxu3 %v1983_v53  ;;  %v1784_v57 = vsel %vm1781_vm15, %v1783_v27, %v1779_v49  ;;  %v1818_v59 = vsub.f32 1.0, %v1817_v37  ;;  %v1161_v51 = vadd.f32 %v5403_v19, %v5401_v15  ;;  %v1903_v47 = vmul.f32 %v1814_v3, %v5148_v12 }
 0x20d   : > { %v1833_v14 = vsub.f32 1.0, %v1832_v4  ;;  %v1259_v63 = vadd.f32 %v5410_v16, %v5408_v62  ;;  %v1900_v31 = vmul.f32 %v1769_v58, %v5836_v60  ;;  %v1849_v53 = vmul.f32 %v5442_v43, %v1848_v41 }
 0x20e   : > { %v1934_v44 = vmul.f32 %v1902_v38, %v1163_v56  ;;  %v1901_v15 = vmul.f32 %v1784_v57, %v5839_v28  ;;  %v1864_v12 = vmul.f32 %v5447_v18, %v1863_v5  ;;  %v1935_v19 = vmul.f32 %v1903_v47, %v1261_v11 }
 0x20f   : > { %v5528_v17 = vpop.f32.mrf.mxu2  ;;  %v1819_v62 = vmul.f32 %v5453_v0, %v1818_v59  ;;  %v1932_v16 = vmul.f32 %v1900_v31, %v1161_v51  ;;  %vm1821_vm0 = vweird.f32 %v5413_v22  ;;  %v1827_v24 = vand.u32 2147483648, %v5413_v22 }
 0x210   : > { %v5530_v36 = vpop.f32.mrf.mxu3  ;;  %v1834_v60 = vmul.f32 %v5467_v61, %v1833_v14  ;;  %v1933_v9 = vmul.f32 %v1901_v15, %v1259_v63  ;;  %vm1822_vm1 = vweird.f32 %v5453_v0  ;;  %v1850_v26 = vadd.f32 %v5442_v43, %v1849_v53 }
 0x211   : > { %vm1852_vm2 = vweird.f32 %v5442_v43  ;;  %v1984_v28 = vpack.c.bf16 %v1934_v44, %v1932_v16  ;;  %v1857_v34 = vand.u32 2147483648, %v5399_v13  ;;  %v1865_v7 = vadd.f32 %v5447_v18, %v1864_v12  ;;  %vm5569_vm9 = vmor %vm1821_vm0, %vm1822_vm1  ;;  %v1118_v42 = vpop.f32.mrf.mxu0  ;;  %v1942_v12 = vld [vmem:[#allocation2 + $0xd8] sm:$0xff] }
 0x212   : > { %vm1867_vm3 = vweird.f32 %v5447_v18  ;;  %v1985_v32 = vpack.c.bf16 %v1935_v19, %v1933_v9  ;;  %v1820_v8 = vadd.f32 %v5453_v0, %v1819_v62  ;;  %vm1851_vm4 = vweird.f32 %v5399_v13  ;;  %v1167_v30 = vpop.f32.mrf.mxu1  ;;  %v1943_v9 = vld [vmem:[#allocation2 + $0x18] sm:$0xff] }
 0x213   : > { %v1855_v46 = vand.u32 2147483647, %v5399_v13  ;;  %v1872_v45 = vand.u32 2147483648, %v5405_v35  ;;  %v1835_v23 = vadd.f32 %v5467_v61, %v1834_v60  ;;  %vm1837_vm5 = vweird.f32 %v5467_v61  ;;  %vm5550_vm6 = vmor %vm1851_vm4, %vm1852_vm2 }
 0x214   : > { %vm1866_vm7 = vweird.f32 %v5405_v35  ;;  %v1870_v20 = vand.u32 2147483647, %v5405_v35  ;;  %v1825_v33 = vand.u32 2147483647, %v5413_v22  ;;  %v1842_v1 = vand.u32 2147483648, %v5417_v55 }
 0x215   : > { %v1854_v13 = vsel %vm5550_vm6, %v5442_v43, %v1850_v26  ;;  %vm5561_vm8 = vmor %vm1866_vm7, %vm1867_vm3  ;;  %vm1836_vm10 = vweird.f32 %v5417_v55  ;;  %v1840_v25 = vand.u32 2147483647, %v5417_v55  ;;  %v1858_v39 = vor.u32 1.1754944e-38, %v1857_v34 }
 0x216   : > { %v1869_v43 = vsel %vm5561_vm8, %v5447_v18, %v1865_v7  ;;  %v1824_v22 = vsel %vm5569_vm9, %v5453_v0, %v1820_v8  ;;  %vm5583_vm11 = vmor %vm1836_vm10, %vm1837_vm5  ;;  %vm1856_vm12 = vcmp.eq.f32.partialorder %v1855_v46, 8.507059e+37  ;;  %v1873_v55 = vor.u32 1.1754944e-38, %v1872_v45  ;;  %v1944_v7 = vld [vmem:[#allocation2 + $0x50] sm:$0xff] }
 0x217   : > { %v1216_v37 = vpop.f32.mrf.mxu2  ;;  %v1828_v52 = vor.u32 1.1754944e-38, %v1827_v24  ;;  %v1839_v18 = vsel %vm5583_vm11, %v5467_v61, %v1835_v23  ;;  %v1859_v4 = vsel %vm1856_vm12, %v1858_v39, %v1854_v13  ;;  %vm1871_vm13 = vcmp.eq.f32.partialorder %v1870_v20, 8.507059e+37  ;;  %v1946_v13 = vld [vmem:[#allocation2 + $0x30] sm:$0xff] }
 0x218   : > { %v1265_v49 = vpop.f32.mrf.mxu3  ;;  %vm1826_vm14 = vcmp.eq.f32.partialorder %v1825_v33, 8.507059e+37  ;;  %v1843_v27 = vor.u32 1.1754944e-38, %v1842_v1  ;;  %v1874_v0 = vsel %vm1871_vm13, %v1873_v55, %v1869_v43  ;;  %v1168_v3 = vadd.f32 %v1167_v30, %v1118_v42  ;;  %v1947_v42 = vld [vmem:[#allocation2 + $0x48] sm:$0xff]  ;;  %v1948_v55 = vld [vmem:[#allocation2 + $0x80] sm:$0xff] }
 0x219   : > { %v1829_v41 = vsel %vm1826_vm14, %v1828_v52, %v1824_v22  ;;  %vm1841_vm15 = vcmp.eq.f32.partialorder %v1840_v25, 8.507059e+37  ;;  %v1266_v56 = vadd.f32 %v1265_v49, %v1216_v37  ;;  %v1906_v5 = vmul.f32 %v1859_v4, %v5278_v6 }
 0x21a   : > { %2218 = vmatmul.bf16.gmra.mxu0 %v1984_v28  ;;  %2316 = vmatmul.bf16.gmra.mxu2 %v1984_v28  ;;  %v1844_v58 = vsel %vm1841_vm15, %v1843_v27, %v1839_v18  ;;  %v1166_v11 = vadd.f32 %v5524_v29, %v5522_v48  ;;  %v1907_v57 = vmul.f32 %v1874_v0, %v5285_v50  ;;  %v1940_v48 = vld [vmem:[#allocation2 + $0xb0] sm:$0xff]  ;;  %v1949_v27 = vld [vmem:[#allocation2 + $0x88] sm:$0xff] }
 0x21b   : > { %2267 = vmatmul.bf16.gmra.mxu1 %v1985_v32  ;;  %v1264_v61 = vadd.f32 %v5530_v36, %v5528_v17  ;;  %v1904_v38 = vmul.f32 %v1829_v41, %v5852_v54  ;;  %v1938_v59 = vmul.f32 %v1906_v5, %v1168_v3  ;;  %v1905_v51 = vmul.f32 %v1844_v58, %v5855_v40  ;;  %v1941_v54 = vld [vmem:[#allocation2] sm:$0xff] }
 0x21c   : > { %2365 = vmatmul.bf16.gmra.mxu3 %v1985_v32  ;;  %v1939_v47 = vmul.f32 %v1907_v57, %v1266_v56  ;;  %v1950_v56 = vld [vmem:[#allocation2 + $0xe8] sm:$0xff] }
 0x21d   : > { %v1936_v14 = vmul.f32 %v1904_v38, %v1166_v11  ;;  %v1937_v63 = vmul.f32 %v1905_v51, %v1264_v61  ;;  %v1951_v38 = vld [vmem:[#allocation2 + $0xb8] sm:$0xff] }
 0x21f   : > { %v1986_v31 = vpack.c.bf16 %v1938_v59, %v1936_v14  ;;  %v1987_v53 = vpack.c.bf16 %v1939_v47, %v1937_v63  ;;  %v1952_v14 = vld [vmem:[#allocation2 + $0x60] sm:$0xff] }
 0x22a   : > { %2223 = vmatmul.bf16.gmra.mxu0 %v1986_v31  ;;  %2321 = vmatmul.bf16.gmra.mxu2 %v1986_v31 }
 0x22b   : > { %2272 = vmatmul.bf16.gmra.mxu1 %v1987_v53 }
 0x22c   : > { %2370 = vmatmul.bf16.gmra.mxu3 %v1987_v53 }
 0x237   : > { %v2189_v6 = vpop.f32.mrf.mxu0 }
 0x238   : > { %v2238_v50 = vpop.f32.mrf.mxu1 }
 0x239   : > { %v2239_v29 = vadd.f32 %v2238_v50, %v2189_v6  ;;  %v1953_v50 = vld [vmem:[#allocation2 + $0xf0] sm:$0xff] }
 0x23b   : > { %v2376_v44 = vadd.f32 %v2239_v29, %v1940_v48 }
 0x23d   : > { %2408 = vst [vmem:[#allocation2 + $0xb0] sm:$0xff] %v2376_v44  ;;  %v2287_v17 = vpop.f32.mrf.mxu2 }
 0x23f   : > { %v2336_v36 = vpop.f32.mrf.mxu3  ;;  %v2191_v15 = vpop.f32.mrf.mxu0 }
 0x240   : > { %v2337_v40 = vadd.f32 %v2336_v36, %v2287_v17  ;;  %v2240_v19 = vpop.f32.mrf.mxu1 }
 0x241   : > { %v2241_v16 = vadd.f32 %v2240_v19, %v2191_v15 }
 0x242   : > { %v2377_v62 = vadd.f32 %v2337_v40, %v1941_v54  ;;  %v1954_v54 = vld [vmem:[#allocation2 + $0x8] sm:$0xff] }
 0x243   : > { %v2378_v24 = vadd.f32 %v2241_v16, %v1942_v12 }
 0x244   : > { %2409 = vst [vmem:[#allocation2] sm:$0xff] %v2377_v62  ;;  %v1955_v62 = vld [vmem:[#allocation2 + $0x78] sm:$0xff] }
 0x245   : > { %2410 = vst [vmem:[#allocation2 + $0xd8] sm:$0xff] %v2378_v24  ;;  %v2289_v60 = vpop.f32.mrf.mxu2 }
 0x247   : > { %v2338_v26 = vpop.f32.mrf.mxu3  ;;  %v2194_v28 = vpop.f32.mrf.mxu0 }
 0x248   : > { %v2339_v34 = vadd.f32 %v2338_v26, %v2289_v60  ;;  %v2243_v32 = vpop.f32.mrf.mxu1 }
 0x249   : > { %v2244_v46 = vadd.f32 %v2243_v32, %v2194_v28 }
 0x24a   : > { %v2379_v8 = vadd.f32 %v2339_v34, %v1943_v9  ;;  %v1956_v9 = vld [vmem:[#allocation2 + $0x38] sm:$0xff] }
 0x24b   : > { %v2380_v45 = vadd.f32 %v2244_v46, %v1944_v7 }
 0x24c   : > { %2411 = vst [vmem:[#allocation2 + $0x18] sm:$0xff] %v2379_v8  ;;  %v1957_v8 = vld [vmem:[#allocation2 + $0x58] sm:$0xff] }
 0x24d   : > { %2412 = vst [vmem:[#allocation2 + $0x50] sm:$0xff] %v2380_v45  ;;  %v2292_v23 = vpop.f32.mrf.mxu2 }
 0x24f   : > { %v2341_v20 = vpop.f32.mrf.mxu3  ;;  %v2196_v33 = vpop.f32.mrf.mxu0 }
 0x250   : > { %v2342_v1 = vadd.f32 %v2341_v20, %v2292_v23  ;;  %v2245_v2 = vpop.f32.mrf.mxu1 }
 0x251   : > { %v2246_v25 = vadd.f32 %v2245_v2, %v2196_v33 }
 0x252   : > { %v2381_v35 = vadd.f32 %v2342_v1, %v1945_v10  ;;  %v1958_v10 = vld [vmem:[#allocation2 + $0x40] sm:$0xff] }
 0x253   : > { %v2382_v39 = vadd.f32 %v2246_v25, %v1946_v13 }
 0x254   : > { %2413 = vst [vmem:[#allocation2 + $0x68] sm:$0xff] %v2381_v35  ;;  %v1959_v35 = vld [vmem:[#allocation2 + $0xc8] sm:$0xff] }
 0x255   : > { %2414 = vst [vmem:[#allocation2 + $0x30] sm:$0xff] %v2382_v39  ;;  %v2294_v43 = vpop.f32.mrf.mxu2 }
 0x257   : > { %v2343_v30 = vpop.f32.mrf.mxu3  ;;  %v2199_v22 = vpop.f32.mrf.mxu0 }
 0x258   : > { %v2344_v21 = vadd.f32 %v2343_v30, %v2294_v43  ;;  %v2248_v37 = vpop.f32.mrf.mxu1 }
 0x259   : > { %v2249_v52 = vadd.f32 %v2248_v37, %v2199_v22 }
 0x25a   : > { %v2383_v49 = vadd.f32 %v2344_v21, %v1947_v42  ;;  %v1960_v42 = vld [vmem:[#allocation2 + $0xe0] sm:$0xff] }
 0x25b   : > { %v2384_v18 = vadd.f32 %v2249_v52, %v1948_v55 }
 0x25c   : > { %2415 = vst [vmem:[#allocation2 + $0x48] sm:$0xff] %v2383_v49  ;;  %v1961_v49 = vld [vmem:[#allocation2 + $0x90] sm:$0xff] }
 0x25d   : > { %2416 = vst [vmem:[#allocation2 + $0x80] sm:$0xff] %v2384_v18  ;;  %v2297_v4 = vpop.f32.mrf.mxu2 }
 0x25f   : > { %v2346_v0 = vpop.f32.mrf.mxu3  ;;  %v2201_v3 = vpop.f32.mrf.mxu0 }
 0x260   : > { %v2347_v41 = vadd.f32 %v2346_v0, %v2297_v4  ;;  %v2250_v58 = vpop.f32.mrf.mxu1 }
 0x261   : > { %v2251_v11 = vadd.f32 %v2250_v58, %v2201_v3 }
 0x262   : > { %v2385_v5 = vadd.f32 %v2347_v41, %v1949_v27  ;;  %v1962_v27 = vld [vmem:[#allocation2 + $0x70] sm:$0xff] }
 0x263   : > { %v2386_v57 = vadd.f32 %v2251_v11, %v1950_v56 }
 0x264   : > { %2417 = vst [vmem:[#allocation2 + $0x88] sm:$0xff] %v2385_v5  ;;  %v1963_v5 = vld [vmem:[#allocation2 + $0xc0] sm:$0xff] }
 0x265   : > { %2418 = vst [vmem:[#allocation2 + $0xe8] sm:$0xff] %v2386_v57  ;;  %v2299_v61 = vpop.f32.mrf.mxu2 }
 0x267   : > { %v2348_v59 = vpop.f32.mrf.mxu3  ;;  %v2204_v51 = vpop.f32.mrf.mxu0 }
 0x268   : > { %v2349_v47 = vadd.f32 %v2348_v59, %v2299_v61  ;;  %v2253_v63 = vpop.f32.mrf.mxu1 }
 0x269   : > { %v2254_v53 = vadd.f32 %v2253_v63, %v2204_v51 }
 0x26a   : > { %v2387_v31 = vadd.f32 %v2349_v47, %v1951_v38  ;;  %v1964_v38 = vld [vmem:[#allocation2 + $0xa8] sm:$0xff] }
 0x26b   : > { %v2388_v6 = vadd.f32 %v2254_v53, %v1952_v14 }
 0x26c   : > { %2419 = vst [vmem:[#allocation2 + $0xb8] sm:$0xff] %v2387_v31  ;;  %v1965_v31 = vld [vmem:[#allocation2 + $0xd0] sm:$0xff] }
 0x26d   : > { %2420 = vst [vmem:[#allocation2 + $0x60] sm:$0xff] %v2388_v6  ;;  %v2302_v48 = vpop.f32.mrf.mxu2 }
 0x26f   : > { %v2351_v29 = vpop.f32.mrf.mxu3  ;;  %v2206_v44 = vpop.f32.mrf.mxu0 }
 0x270   : > { %v2352_v17 = vadd.f32 %v2351_v29, %v2302_v48  ;;  %v2255_v36 = vpop.f32.mrf.mxu1 }
 0x271   : > { %v2256_v40 = vadd.f32 %v2255_v36, %v2206_v44 }
 0x272   : > { %v2389_v15 = vadd.f32 %v2352_v17, %v1953_v50  ;;  %v1966_v50 = vld [vmem:[#allocation2 + $0x10] sm:$0xff] }
 0x273   : > { %v2390_v12 = vadd.f32 %v2256_v40, %v1954_v54 }
 0x274   : > { %2421 = vst [vmem:[#allocation2 + $0xf0] sm:$0xff] %v2389_v15  ;;  %v1967_v15 = vld [vmem:[#allocation2 + $0x28] sm:$0xff] }
 0x275   : > { %2422 = vst [vmem:[#allocation2 + $0x8] sm:$0xff] %v2390_v12  ;;  %v2304_v19 = vpop.f32.mrf.mxu2 }
 0x277   : > { %v2353_v16 = vpop.f32.mrf.mxu3  ;;  %v2209_v24 = vpop.f32.mrf.mxu0 }
 0x278   : > { %v2354_v60 = vadd.f32 %v2353_v16, %v2304_v19  ;;  %v2258_v26 = vpop.f32.mrf.mxu1 }
 0x279   : > { %v2259_v34 = vadd.f32 %v2258_v26, %v2209_v24 }
 0x27a   : > { %v2391_v28 = vadd.f32 %v2354_v60, %v1955_v62  ;;  %v1968_v62 = vld [vmem:[#allocation2 + $0xa0] sm:$0xff] }
 0x27b   : > { %v2392_v7 = vadd.f32 %v2259_v34, %v1956_v9 }
 0x27c   : > { %2423 = vst [vmem:[#allocation2 + $0x78] sm:$0xff] %v2391_v28  ;;  %v1969_v28 = vld [vmem:[#allocation2 + $0xf8] sm:$0xff] }
 0x27d   : > { %2424 = vst [vmem:[#allocation2 + $0x38] sm:$0xff] %v2392_v7  ;;  %v2307_v32 = vpop.f32.mrf.mxu2 }
 0x27f   : > { %v2356_v46 = vpop.f32.mrf.mxu3  ;;  %v2211_v45 = vpop.f32.mrf.mxu0 }
 0x280   : > { %v2357_v23 = vadd.f32 %v2356_v46, %v2307_v32  ;;  %v2260_v20 = vpop.f32.mrf.mxu1 }
 0x281   : > { %v2261_v1 = vadd.f32 %v2260_v20, %v2211_v45 }
 0x282   : > { %v2393_v33 = vadd.f32 %v2357_v23, %v1957_v8  ;;  %v1970_v8 = vld [vmem:[#allocation2 + $0x20] sm:$0xff] }
 0x283   : > { %v2394_v13 = vadd.f32 %v2261_v1, %v1958_v10 }
 0x284   : > { %2425 = vst [vmem:[#allocation2 + $0x58] sm:$0xff] %v2393_v33  ;;  %v1971_v33 = vld [vmem:[#allocation2 + $0x98] sm:$0xff] }
 0x285   : > { %2426 = vst [vmem:[#allocation2 + $0x40] sm:$0xff] %v2394_v13  ;;  %v2309_v2 = vpop.f32.mrf.mxu2 }
 0x287   : > { %v2358_v25 = vpop.f32.mrf.mxu3  ;;  %v2214_v39 = vpop.f32.mrf.mxu0 }
 0x288   : > { %v2359_v43 = vadd.f32 %v2358_v25, %v2309_v2  ;;  %v2263_v30 = vpop.f32.mrf.mxu1 }
 0x289   : > { %v2264_v21 = vadd.f32 %v2263_v30, %v2214_v39 }
 0x28a   : > { %v2395_v22 = vadd.f32 %v2359_v43, %v1959_v35 }
 0x28b   : > { %v2396_v55 = vadd.f32 %v2264_v21, %v1960_v42 }
 0x28c   : > { %2427 = vst [vmem:[#allocation2 + $0xc8] sm:$0xff] %v2395_v22 }
 0x28d   : > { %2428 = vst [vmem:[#allocation2 + $0xe0] sm:$0xff] %v2396_v55  ;;  %v2312_v37 = vpop.f32.mrf.mxu2 }
 0x28f   : > { %v2361_v52 = vpop.f32.mrf.mxu3  ;;  %v2216_v18 = vpop.f32.mrf.mxu0 }
 0x290   : > { %v2362_v4 = vadd.f32 %v2361_v52, %v2312_v37  ;;  %v2265_v0 = vpop.f32.mrf.mxu1 }
 0x291   : > { %v2266_v41 = vadd.f32 %v2265_v0, %v2216_v18 }
 0x292   : > { %v2397_v3 = vadd.f32 %v2362_v4, %v1961_v49 }
 0x293   : > { %v2398_v56 = vadd.f32 %v2266_v41, %v1962_v27 }
 0x294   : > { %2429 = vst [vmem:[#allocation2 + $0x90] sm:$0xff] %v2397_v3 }
 0x295   : > { %2430 = vst [vmem:[#allocation2 + $0x70] sm:$0xff] %v2398_v56  ;;  %v2314_v58 = vpop.f32.mrf.mxu2 }
 0x297   : > { %v2363_v11 = vpop.f32.mrf.mxu3  ;;  %v2219_v57 = vpop.f32.mrf.mxu0 }
 0x298   : > { %v2364_v61 = vadd.f32 %v2363_v11, %v2314_v58  ;;  %v2268_v59 = vpop.f32.mrf.mxu1 }
 0x299   : > { %v2269_v47 = vadd.f32 %v2268_v59, %v2219_v57 }
 0x29a   : > { %v2399_v51 = vadd.f32 %v2364_v61, %v1963_v5 }
 0x29b   : > { %v2400_v14 = vadd.f32 %v2269_v47, %v1964_v38 }
 0x29c   : > { %2431 = vst [vmem:[#allocation2 + $0xc0] sm:$0xff] %v2399_v51 }
 0x29d   : > { %2432 = vst [vmem:[#allocation2 + $0xa8] sm:$0xff] %v2400_v14  ;;  %v2317_v63 = vpop.f32.mrf.mxu2 }
 0x29f   : > { %v2366_v53 = vpop.f32.mrf.mxu3  ;;  %v2221_v6 = vpop.f32.mrf.mxu0 }
 0x2a0   : > { %v2367_v48 = vadd.f32 %v2366_v53, %v2317_v63  ;;  %v2270_v29 = vpop.f32.mrf.mxu1 }
 0x2a1   : > { %v2271_v17 = vadd.f32 %v2270_v29, %v2221_v6 }
 0x2a2   : > { %v2401_v44 = vadd.f32 %v2367_v48, %v1965_v31 }
 0x2a3   : > { %v2402_v54 = vadd.f32 %v2271_v17, %v1966_v50 }
 0x2a4   : > { %2433 = vst [vmem:[#allocation2 + $0xd0] sm:$0xff] %v2401_v44 }
 0x2a5   : > { %2434 = vst [vmem:[#allocation2 + $0x10] sm:$0xff] %v2402_v54  ;;  %v2319_v36 = vpop.f32.mrf.mxu2 }
 0x2a7   : > { %v2368_v40 = vpop.f32.mrf.mxu3  ;;  %v2224_v12 = vpop.f32.mrf.mxu0 }
 0x2a8   : > { %v2369_v19 = vadd.f32 %v2368_v40, %v2319_v36  ;;  %v2273_v16 = vpop.f32.mrf.mxu1 }
 0x2a9   : > { %v2274_v60 = vadd.f32 %v2273_v16, %v2224_v12 }
 0x2aa   : > { %v2403_v24 = vadd.f32 %v2369_v19, %v1967_v15 }
 0x2ab   : > { %v2404_v9 = vadd.f32 %v2274_v60, %v1968_v62 }
 0x2ac   : > { %2435 = vst [vmem:[#allocation2 + $0x28] sm:$0xff] %v2403_v24 }
 0x2ad   : > { %2436 = vst [vmem:[#allocation2 + $0xa0] sm:$0xff] %v2404_v9  ;;  %v2322_v26 = vpop.f32.mrf.mxu2 }
 0x2af   : > { %v2371_v34 = vpop.f32.mrf.mxu3  ;;  %v2226_v32 = vpop.f32.mrf.mxu0 }
 0x2b0   : > { %v2372_v7 = vadd.f32 %v2371_v34, %v2322_v26  ;;  %v2275_v46 = vpop.f32.mrf.mxu1 }
 0x2b1   : > { %v2276_v23 = vadd.f32 %v2275_v46, %v2226_v32 }
 0x2b2   : > { %v2405_v45 = vadd.f32 %v2372_v7, %v1969_v28 }
 0x2b3   : > { %v2406_v10 = vadd.f32 %v2276_v23, %v1970_v8 }
 0x2b4   : > { %2437 = vst [vmem:[#allocation2 + $0xf8] sm:$0xff] %v2405_v45 }
 0x2b5   : > { %2438 = vst [vmem:[#allocation2 + $0x20] sm:$0xff] %v2406_v10  ;;  %v2324_v20 = vpop.f32.mrf.mxu2 }
 0x2b7   : > { %v2373_v1 = vpop.f32.mrf.mxu3 }
 0x2b8   : > { %v2374_v13 = vadd.f32 %v2373_v1, %v2324_v20  ;;  %2443 = sbr.rel (%p3180_p7) target bundleno = 720 (0x2d0), region = 60 }
 0x2ba   : > { %v2407_v2 = vadd.f32 %v2374_v13, %v1971_v33 }
 0x2bc   : > { %2439 = vst [vmem:[#allocation2 + $0x98] sm:$0xff] %v2407_v2 }
 0x2bd   : > { %v2444_v35 = vld [vmem:[#allocation2 + $0xb0] sm:$0xff]  ;;  %v2445_v25 = vld [vmem:[#allocation2] sm:$0xff]  ;;  %v2446_v39 = vld [vmem:[#allocation2 + $0xd8] sm:$0xff] }
 0x2be   : > { %v2476_v43 = vpack.c.bf16 %v2445_v25, %v2444_v35  ;;  %v2447_v42 = vld [vmem:[#allocation2 + $0x18] sm:$0xff]  ;;  %v2448_v30 = vld [vmem:[#allocation2 + $0x50] sm:$0xff]  ;;  %v2449_v22 = vld [vmem:[#allocation2 + $0x68] sm:$0xff] }
 0x2bf   : > { %v2477_v21 = vpack.c.bf16 %v2447_v42, %v2446_v39  ;;  %v2478_v55 = vpack.c.bf16 %v2449_v22, %v2448_v30  ;;  %v2450_v37 = vld [vmem:[#allocation2 + $0x30] sm:$0xff]  ;;  %v2451_v49 = vld [vmem:[#allocation2 + $0x48] sm:$0xff]  ;;  %v2452_v52 = vld [vmem:[#allocation2 + $0x80] sm:$0xff] }
 0x2c0   : > { %2492 = vst [vmem:[%s4075_s9] sm:$0xff] %v2476_v43  ;;  %v2479_v18 = vpack.c.bf16 %v2451_v49, %v2450_v37  ;;  %v2453_v4 = vld [vmem:[#allocation2 + $0x88] sm:$0xff]  ;;  %v2455_v0 = vld [vmem:[#allocation2 + $0xb8] sm:$0xff]  ;;  %v2456_v56 = vld [vmem:[#allocation2 + $0x60] sm:$0xff] }
 0x2c1   : > { %v2454_v27 = vld [vmem:[#allocation2 + $0xe8] sm:$0xff]  ;;  %2493 = vst [vmem:[%s4075_s9 + $0x8] sm:$0xff] %v2477_v21  ;;  %v2480_v3 = vpack.c.bf16 %v2453_v4, %v2452_v52  ;;  %v2457_v58 = vld [vmem:[#allocation2 + $0xf0] sm:$0xff]  ;;  %v2459_v57 = vld [vmem:[#allocation2 + $0x78] sm:$0xff] }
 0x2c2   : > { %v2481_v41 = vpack.c.bf16 %v2455_v0, %v2454_v27  ;;  %v2458_v5 = vld [vmem:[#allocation2 + $0x8] sm:$0xff]  ;;  %2494 = vst [vmem:[%s4075_s9 + $0x10] sm:$0xff] %v2478_v55  ;;  %v2482_v11 = vpack.c.bf16 %v2457_v58, %v2456_v56  ;;  %v2460_v61 = vld [vmem:[#allocation2 + $0x38] sm:$0xff]  ;;  %v2462_v51 = vld [vmem:[#allocation2 + $0x40] sm:$0xff] }
 0x2c3   : > { %v2461_v38 = vld [vmem:[#allocation2 + $0x58] sm:$0xff]  ;;  %2495 = vst [vmem:[%s4075_s9 + $0x18] sm:$0xff] %v2479_v18  ;;  %v2483_v59 = vpack.c.bf16 %v2459_v57, %v2458_v5  ;;  %v2463_v47 = vld [vmem:[#allocation2 + $0xc8] sm:$0xff]  ;;  %v2464_v14 = vld [vmem:[#allocation2 + $0xe0] sm:$0xff] }
 0x2c4   : > { %2496 = vst [vmem:[%s4075_s9 + $0x20] sm:$0xff] %v2480_v3  ;;  %v2484_v63 = vpack.c.bf16 %v2461_v38, %v2460_v61  ;;  %v2465_v31 = vld [vmem:[#allocation2 + $0x90] sm:$0xff]  ;;  %v2467_v6 = vld [vmem:[#allocation2 + $0xc0] sm:$0xff]  ;;  %v2485_v48 = vpack.c.bf16 %v2463_v47, %v2462_v51  ;;  %v2468_v50 = vld [vmem:[#allocation2 + $0xa8] sm:$0xff] }
 0x2c5   : > { %v2466_v53 = vld [vmem:[#allocation2 + $0x70] sm:$0xff]  ;;  %2497 = vst [vmem:[%s4075_s9 + $0x28] sm:$0xff] %v2481_v41  ;;  %v2486_v44 = vpack.c.bf16 %v2465_v31, %v2464_v14  ;;  %v2471_v54 = vld [vmem:[#allocation2 + $0x28] sm:$0xff]  ;;  %v2472_v15 = vld [vmem:[#allocation2 + $0xa0] sm:$0xff] }
 0x2c6   : > { %v2469_v29 = vld [vmem:[#allocation2 + $0xd0] sm:$0xff]  ;;  %2498 = vst [vmem:[%s4075_s9 + $0x30] sm:$0xff] %v2482_v11  ;;  %v2487_v36 = vpack.c.bf16 %v2467_v6, %v2466_v53  ;;  %v2473_v40 = vld [vmem:[#allocation2 + $0xf8] sm:$0xff]  ;;  %v2474_v19 = vld [vmem:[#allocation2 + $0x20] sm:$0xff] }
 0x2c7   : > { %v2470_v17 = vld [vmem:[#allocation2 + $0x10] sm:$0xff]  ;;  %2499 = vst [vmem:[%s4075_s9 + $0x38] sm:$0xff] %v2483_v59  ;;  %v2488_v12 = vpack.c.bf16 %v2469_v29, %v2468_v50  ;;  %v2475_v62 = vld [vmem:[#allocation2 + $0x98] sm:$0xff]  ;;  %v2490_v24 = vpack.c.bf16 %v2473_v40, %v2472_v15 }
 0x2c8   : > { %2500 = vst [vmem:[%s4075_s9 + $0x40] sm:$0xff] %v2484_v63  ;;  %v2489_v16 = vpack.c.bf16 %v2471_v54, %v2470_v17  ;;  %v2491_v60 = vpack.c.bf16 %v2475_v62, %v2474_v19 }
 0x2c9   : > { %2501 = vst [vmem:[%s4075_s9 + $0x48] sm:$0xff] %v2485_v48 }
 0x2ca   : > { %2502 = vst [vmem:[%s4075_s9 + $0x50] sm:$0xff] %v2486_v44 }
 0x2cb   : > { %2503 = vst [vmem:[%s4075_s9 + $0x58] sm:$0xff] %v2487_v36 }
 0x2cc   : > { %2504 = vst [vmem:[%s4075_s9 + $0x60] sm:$0xff] %v2488_v12 }
 0x2cd   : > { %2505 = vst [vmem:[%s4075_s9 + $0x68] sm:$0xff] %v2489_v16 }
 0x2ce   : > { %2506 = vst [vmem:[%s4075_s9 + $0x70] sm:$0xff] %v2490_v24 }
 0x2cf   : > { %2507 = vst [vmem:[%s4075_s9 + $0x78] sm:$0xff] %v2491_v60 }
 0x2d0 PF: > { %s5882_s21 = sld [smem:[#allocation18_spill]]  ;;  %s2522_s13 = sshll.u32 %s4075_s9, 4  ;;  %s2523_s13 = int_to_ptr.vmem [resolvable:$true] %s2522_s13 }
 0x2d1   : > { %s5884_s6 = sld [smem:[#allocation57_spill]]  ;;  %s2509_s30 = scalar_lea.sflag [#allocation5], %s4049_s20 }
 0x2d6   : > { %s3306_s26 = sshll.u32 %s5882_s21, 7 }
 0x2d7   : > { %s2521_s10 = scalar_lea.hbm %s5884_s6, %s3306_s26  ;;  %s3698_s12 = scalar_lea.hbm %s5884_s6, 256 }
 0x2d8   : > { %s2524_s14 = sshll.u32 %s2521_s10, 4  ;;  %s2525_s14 = int_to_ptr.hbm [resolvable:$true] %s2524_s14 }
 0x2d9   : > { %s3692_s1 = sshra.s32 %s2525_s14, 4  ;;  %s3693_s1 = int_to_ptr.hbm [resolvable:$true] %s3692_s1 }
 0x2da   : > { %s3694_s2 = scalar_lea.hbm %s3693_s1, 128  ;;  %p3699_p4 = scmp.lt.s32.totalorder %s3693_s1, %s5884_s6 }
 0x2db   : > { %p3695_p10 = scmp.ne.s32.totalorder %s3693_s1, %s3694_s2  ;;  %p3700_p6 = scmp.lt.s32.totalorder %s3698_s12, %s3694_s2 }
 0x2dd   : > { %p3696_p13 = pnand %p3695_p10, %p4000_p12  ;;  %p3701_p1 = por %p3700_p6, %p3699_p4 }
 0x2df   : > { %p3697_p2 = pneg %p3696_p13 }
 0x2e1   : > { %p3702_p0 = pnand %p3701_p1, %p3697_p2 }
 0x2e3   : > { %3705 = shalt.err (!%p3702_p0)
}
 0x2e4   : > { %s3814_s20 = smov 128   ;;  %s3815_s24 = smov 8  }
 0x2e5   : > { %3315 = dma.vmem_to_hbm [thread:$0]  (%p4000_p12), %s2523_s13, 2048, %s2525_s14, %s2509_s30, %s3814_s20, %s3814_s20, %s3815_s24  }
 0x2e6 PF: > { %s5885_s28 = sld [smem:[#allocation16_spill]]  ;;  %p3335_p8 = scmp.ge.s32.totalorder %s3808_s25, 2 }
 0x2e8   : > { %p3331_p9 = pnand %p3335_p8, %p4011_p3 }
 0x2ea   : > { %p3332_p11 = pneg %p3331_p9 }
 0x2ec   : > { %s2539_s5 = sand.u32 1, %s5885_s28  }
 0x2ed   : > { %s2540_s15 = scalar_lea.sflag [#allocation5], %s2539_s5 }
 0x2ee   : > { %3763 = dma.done.wait (%p3332_p11), %s2540_s15, 2048  }
 0x2ef   : > { %3765 = vsyncadd (%p3332_p11), %s2540_s15, 4294965248  ;;  %s26_s25 = sadd.s32 1, %s3808_s25   ;;  %s5887_s27 = sld [smem:[#allocation21_spill]] }
 0x2f0   : > { %p23_p5 = scmp.ge.s32.totalorder %s26_s25, 6   ;;  %s5888_s9 = sld [smem:[#allocation17_spill]] }
 0x2f1   : > { %s5889_s20 = sld [smem:[#allocation24_spill]]  ;;  %s5893_s15 = smov %s3772_s16 }
 0x2f2   : > { %s5890_s22 = sld [smem:[#allocation19_spill]]  ;;  %s5894_s16 = smov %s3776_s17 }
 0x2f3   : > { %s5891_s11 = sld [smem:[#allocation20_spill]]  ;;  %s5896_s18 = smov %s3784_s19 }
 0x2f4   : > { %s5892_s24 = sld [smem:[#allocation22_spill]]  ;;  %s5898_s21 = smov %s3800_s23 }
 0x2f5   : > { %s5895_s17 = smov %s5887_s27  ;;  %25 = sbr.rel (!%p23_p5) target bundleno = 18 (0x12), region = 126 }
 0x2f6   : > { %s5897_s19 = smov %s5888_s9 }
 0x2f9   : > { %s5899_s23 = smov %s5891_s11 }
 0x2fa   :  { %2546 = vsyncpa [#allocation4], 1 }
 0x2fb   :  { %2548 = vsyncpa [#allocation4 + $0x1], 1 }
 0x2fc   :  { %2549 = vsyncpa [#allocation7], 1 }
 0x2fd   :  { %2551 = vsyncpa [#allocation7 + $0x1], 1 }
 0x2fe   :  { %2552 = vsyncpa [#allocation10], 1 }
 0x2ff   :  { %2554 = vsyncpa [#allocation10 + $0x1], 1 }
 0x300   :  { %2555 = vsyncpa [#allocation5], 1 }
 0x301   :  { %2557 = vsyncpa [#allocation5 + $0x1], 1 }

</bundles_post_ra>
